<compile_context>
chip_gen: v5e
topology: v5e:2x2
jax: 0.10.0
libtpu: 0.0.40
codegen_flags: <defaults>
</compile_context>

<pallas_src>
import math
from functools import partial

import numpy as np
import jax
import jax.numpy as jnp
from jax.experimental import pallas as pl
from jax.experimental.pallas import tpu as pltpu


def _stick_breaking_kernel(feats_ref, seeds_ref, w_in_ref, b_in_ref, w_out_ref, b_out_ref,
                           slots_ref, masks_ref, stats_ref,
                           *, n_slots, inv_kernel_var, eps, log_eps):
    x = feats_ref[0]                                             # (N, D) original features
    N, D = x.shape

    # ---- in_proj (Linear) + L2 normalize (MXU matmul + EUP rsqrt) ----
    proj = jnp.dot(x, w_in_ref[...], preferred_element_type=jnp.float32) + b_in_ref[...]
    sumsq = jnp.sum(proj * proj, axis=-1, keepdims=True)
    proj = proj * jax.lax.rsqrt(jnp.maximum(sumsq, 1e-24))       # (N, D), unit-norm rows

    # ---- stick breaking loop: everything lane-dense as (1, N) rows ----
    log_seeds = jnp.log(jnp.maximum(seeds_ref[0], eps))          # (1, N)
    log_scope = jnp.zeros((1, N), jnp.float32)
    lane_iota = jax.lax.broadcasted_iota(jnp.int32, (1, N), 1)

    mask_rows = []
    scope_rows = []
    for _ in range(n_slots):
        scope = jnp.exp(log_scope)                               # (1, N), reused for the mask
        scope_rows.append(scope)

        # argmax over pixels (first-occurrence tie-break) as a one-hot lane row
        scores = log_scope + log_seeds
        max_score = jnp.max(scores)
        idx = jnp.min(jnp.where(scores == max_score, lane_iota, N))
        sel = (lane_iota == idx).astype(jnp.float32)             # (1, N)

        # center gather + squared distance on the MXU (unit rows: ||c - p||^2 = 2 - 2 c.p)
        center = jnp.dot(sel, proj, preferred_element_type=jnp.float32)          # (1, D)
        dots = jax.lax.dot_general(center, proj, (((1,), (1,)), ((), ())),
                                   preferred_element_type=jnp.float32)           # (1, N)
        dists = jnp.maximum(2.0 - 2.0 * dots, 0.0)

        log_alpha = jnp.maximum(-dists * inv_kernel_var, log_eps)
        alpha = jnp.exp(log_alpha)
        mask_rows.append(scope * alpha)                          # = exp(log_scope + log_alpha)

        log_scope = log_scope + jnp.log(jnp.maximum(1.0 - alpha, eps))

    masks_kn = jnp.concatenate(mask_rows, axis=0)                # (K, N), in registers
    scopes_kn = jnp.concatenate(scope_rows, axis=0)              # (K, N)
    masks_ref[0] = masks_kn                                      # single lane-dense store

    # ---- per-slot stats for the empty-slot logic (tiny (K, 3) output; scopes stay in VMEM) ----
    mask_sum = jnp.sum(masks_kn, axis=-1, keepdims=True)         # (K, 1)
    stats_ref[0] = jnp.concatenate(
        [jnp.mean(scopes_kn, axis=-1, keepdims=True),            # mean scope per slot
         mask_sum * (1.0 / N),                                   # mean mask per slot
         jnp.max(masks_kn, axis=-1, keepdims=True)],             # max mask per slot
        axis=-1)                                                 # (K, 3)

    # ---- slot aggregation: slots = masks @ features (MXU), normalize, out_proj ----
    slots_kd = jnp.dot(masks_kn, x, preferred_element_type=jnp.float32)           # (K, D)
    slots_norm = slots_kd / jnp.maximum(mask_sum, eps)
    slots_ref[0] = jnp.dot(slots_norm, w_out_ref[...],
                           preferred_element_type=jnp.float32) + b_out_ref[...]   # (K, O)


def stick_breaking_grouping(features, seeds, w_in_t, b_in, w_out_t, b_out,
                            *, n_slots, kernel_var=1.0, eps=1e-8,
                            max_unexplained=0.0, min_slot_mask=0.0, min_max_mask_value=0.0):
    """features: (B, N, D) f32; seeds: (B, 1, N) uniform[0,1); w_in_t: (D, D); w_out_t: (D, O)."""
    bs, N, D = features.shape
    O = w_out_t.shape[1]
    K = n_slots

    kernel = partial(_stick_breaking_kernel, n_slots=K, inv_kernel_var=1.0 / kernel_var,
                     eps=eps, log_eps=math.log(eps))

    slots, slot_masks, stats = pl.pallas_call(
        kernel,
        out_shape=(jax.ShapeDtypeStruct((bs, K, O), jnp.float32),
                   jax.ShapeDtypeStruct((bs, K, N), jnp.float32),
                   jax.ShapeDtypeStruct((bs, K, 3), jnp.float32)),
        grid=(bs,),
        in_specs=[pl.BlockSpec((1, N, D), lambda b: (b, 0, 0)),
                  pl.BlockSpec((1, 1, N), lambda b: (b, 0, 0)),
                  pl.BlockSpec((D, D), lambda b: (0, 0)),
                  pl.BlockSpec((1, D), lambda b: (0, 0)),
                  pl.BlockSpec((D, O), lambda b: (0, 0)),
                  pl.BlockSpec((1, O), lambda b: (0, 0))],
        out_specs=(pl.BlockSpec((1, K, O), lambda b: (b, 0, 0)),
                   pl.BlockSpec((1, K, N), lambda b: (b, 0, 0)),
                   pl.BlockSpec((1, K, 3), lambda b: (b, 0, 0))),
        compiler_params=pltpu.CompilerParams(dimension_semantics=("parallel",)),
    )(features, seeds, w_in_t, b_in, w_out_t, b_out)

    # glue: empty-slot logic from in-kernel stats (all False with default thresholds)
    empty_slots = ((stats[..., 0] < max_unexplained)
                   | (stats[..., 1] < min_slot_mask)
                   | (stats[..., 2] < min_max_mask_value))
    slots = jnp.where(empty_slots[..., None], 0.0, slots)
    return slots, slot_masks, empty_slots


def _reference(features, seeds, w_in_t, b_in, w_out_t, b_out, *, n_slots, kernel_var, eps):
    """Pure-JAX reference mirroring the PyTorch forward (default config)."""
    hp = jax.lax.Precision.HIGHEST
    proj = jnp.dot(features, w_in_t, precision=hp) + b_in
    proj = proj / jnp.maximum(jnp.sqrt(jnp.sum(proj * proj, -1, keepdims=True)), 1e-12)
    bs, N, D = features.shape
    log_eps = math.log(eps)
    log_scope = jnp.zeros((bs, N), jnp.float32)
    log_seeds = jnp.log(jnp.maximum(seeds[:, 0, :], eps))
    masks = []
    for _ in range(n_slots):
        idx = jnp.argmax(log_scope + log_seeds, axis=1)
        centers = jnp.take_along_axis(proj, idx[:, None, None], axis=1)     # (bs, 1, D)
        dists = jnp.sum((centers - proj) ** 2, axis=-1)                     # (bs, N)
        log_alpha = jnp.maximum(-dists / kernel_var, log_eps)
        masks.append(jnp.exp(log_scope + log_alpha))
        log_scope = log_scope + jnp.log(jnp.maximum(1.0 - jnp.exp(log_alpha), eps))
    slot_masks = jnp.stack(masks, axis=1)                                   # (bs, K, N)
    slots = jnp.einsum('bkp,bpd->bkd', slot_masks, features, precision=hp)
    slots = slots / jnp.maximum(jnp.sum(slot_masks, -1, keepdims=True), eps)
    slots = jnp.einsum('bkd,do->bko', slots, w_out_t, precision=hp) + b_out
    return slots, slot_masks


if __name__ == "__main__":
    # Module config: object_dim=16, feature_dim=32, n_slots=4, kernel_var=1.0 (defaults otherwise).
    bs, N, D, O, K = 2, 64, 32, 16, 4
    kernel_var = 1.0
    eps = 1e-8

    key = jax.random.PRNGKey(0)
    k_feat, k_seed, k_win, k_wout = jax.random.split(key, 4)

    features = jax.random.normal(k_feat, (bs, N, D), jnp.float32)
    seeds = jax.random.uniform(k_seed, (bs, 1, N), jnp.float32)   # torch.rand_like equivalent

    # xavier_uniform init (transposed weights: (in, out)), zero biases
    lim_in = math.sqrt(6.0 / (D + D))
    w_in_t = jax.random.uniform(k_win, (D, D), jnp.float32, -lim_in, lim_in)
    b_in = jnp.zeros((1, D), jnp.float32)
    lim_out = math.sqrt(6.0 / (D + O))
    w_out_t = jax.random.uniform(k_wout, (D, O), jnp.float32, -lim_out, lim_out)
    b_out = jnp.zeros((1, O), jnp.float32)

    slots, slot_masks, empty_slots = stick_breaking_grouping(
        features, seeds, w_in_t, b_in, w_out_t, b_out,
        n_slots=K, kernel_var=kernel_var, eps=eps)
    slots = jax.block_until_ready(slots)

    ref_slots, ref_masks = _reference(features, seeds, w_in_t, b_in, w_out_t, b_out,
                                      n_slots=K, kernel_var=kernel_var, eps=eps)

    np.testing.assert_allclose(np.asarray(slot_masks), np.asarray(ref_masks),
                               rtol=5e-4, atol=5e-4)
    np.testing.assert_allclose(np.asarray(slots), np.asarray(ref_slots),
                               rtol=5e-4, atol=5e-4)
    assert not bool(np.asarray(empty_slots).any())

    print("KERNEL_OK")
</pallas_src>

<mosaic_0001>
module attributes {stable_mosaic.version = 11 : i64} {
  func.func @_stick_breaking_kernel(%arg0: i32, %arg1: memref<1x64x32xf32, #tpu.memory_space<vmem>>, %arg2: memref<1x1x64xf32, #tpu.memory_space<vmem>>, %arg3: memref<32x32xf32, #tpu.memory_space<vmem>>, %arg4: memref<1x32xf32, #tpu.memory_space<vmem>>, %arg5: memref<32x16xf32, #tpu.memory_space<vmem>>, %arg6: memref<1x16xf32, #tpu.memory_space<vmem>>, %arg7: memref<1x4x16xf32, #tpu.memory_space<vmem>>, %arg8: memref<1x4x64xf32, #tpu.memory_space<vmem>>, %arg9: memref<1x4x3xf32, #tpu.memory_space<vmem>>) attributes {dimension_semantics = [#tpu.dimension_semantics<parallel>], iteration_bounds = array<i64: 2>, scalar_prefetch = 0 : i64, scratch_operands = 0 : i64, tpu.core_type = #tpu.core_type<tc>, window_params = [{transform_indices = @transform_0, window_bounds = array<i64: 1, 64, 32>}, {transform_indices = @transform_1, window_bounds = array<i64: 1, 1, 64>}, {pipeline_mode = #tpu.pipeline_mode<synchronous>, transform_indices = @transform_2, window_bounds = array<i64: 32, 32>}, {pipeline_mode = #tpu.pipeline_mode<synchronous>, transform_indices = @transform_3, window_bounds = array<i64: 1, 32>}, {pipeline_mode = #tpu.pipeline_mode<synchronous>, transform_indices = @transform_4, window_bounds = array<i64: 32, 16>}, {pipeline_mode = #tpu.pipeline_mode<synchronous>, transform_indices = @transform_5, window_bounds = array<i64: 1, 16>}, {transform_indices = @transform_6, window_bounds = array<i64: 1, 4, 16>}, {transform_indices = @transform_7, window_bounds = array<i64: 1, 4, 64>}, {transform_indices = @transform_8, window_bounds = array<i64: 1, 4, 3>}]} {
    %c0 = arith.constant 0 : index
    %c0_0 = arith.constant 0 : index
    %c0_1 = arith.constant 0 : index
    %0 = vector.load %arg1[%c0, %c0_0, %c0_1] : memref<1x64x32xf32, #tpu.memory_space<vmem>>, vector<1x64x32xf32>
    %1 = vector.shape_cast %0 : vector<1x64x32xf32> to vector<64x32xf32>
    %c0_2 = arith.constant 0 : index
    %c0_3 = arith.constant 0 : index
    %2 = vector.load %arg3[%c0_2, %c0_3] : memref<32x32xf32, #tpu.memory_space<vmem>>, vector<32x32xf32>
    %cst = arith.constant dense<0.000000e+00> : vector<64x32xf32>
    %3 = tpu.matmul %1, %2, %cst {dimension_numbers = #tpu.dot_dimension_numbers<[1], [0], [0], [1], [0, 0, 1, 1], [], []>} : vector<64x32xf32>, vector<32x32xf32>, vector<64x32xf32> -> vector<64x32xf32>
    %c0_4 = arith.constant 0 : index
    %c0_5 = arith.constant 0 : index
    %4 = vector.load %arg4[%c0_4, %c0_5] : memref<1x32xf32, #tpu.memory_space<vmem>>, vector<1x32xf32>
    %5 = vector.broadcast %4 : vector<1x32xf32> to vector<64x32xf32>
    %6 = arith.addf %3, %5 : vector<64x32xf32>
    %7 = arith.mulf %6, %6 : vector<64x32xf32>
    %cst_6 = arith.constant dense<0.000000e+00> : vector<64xf32>
    %8 = vector.multi_reduction <add>, %7, %cst_6 [1] : vector<64x32xf32> to vector<64xf32>
    %9 = vector.shape_cast %8 : vector<64xf32> to vector<64x1xf32>
    %cst_7 = arith.constant 1.000000e-24 : f32
    %10 = vector.broadcast %cst_7 : f32 to vector<64x1xf32>
    %11 = arith.maximumf %9, %10 : vector<64x1xf32>
    %12 = math.rsqrt %11 : vector<64x1xf32>
    %13 = vector.broadcast %12 : vector<64x1xf32> to vector<64x32xf32>
    %14 = arith.mulf %6, %13 : vector<64x32xf32>
    %c0_8 = arith.constant 0 : index
    %c0_9 = arith.constant 0 : index
    %c0_10 = arith.constant 0 : index
    %15 = vector.load %arg2[%c0_8, %c0_9, %c0_10] : memref<1x1x64xf32, #tpu.memory_space<vmem>>, vector<1x1x64xf32>
    %16 = vector.shape_cast %15 : vector<1x1x64xf32> to vector<1x64xf32>
    %cst_11 = arith.constant 9.99999993E-9 : f32
    %17 = vector.broadcast %cst_11 : f32 to vector<1x64xf32>
    %18 = arith.maximumf %16, %17 : vector<1x64xf32>
    %19 = math.log %18 : vector<1x64xf32>
    %cst_12 = arith.constant 0.000000e+00 : f32
    %20 = vector.broadcast %cst_12 : f32 to vector<1x64xf32>
    %21 = tpu.iota {dimensions = array<i32: 1>} : vector<1x64xi32>
    %22 = math.exp %20 : vector<1x64xf32>
    %23 = arith.addf %20, %19 : vector<1x64xf32>
    %24 = vector.shape_cast %23 : vector<1x64xf32> to vector<1x1x64xf32>
    %cst_13 = arith.constant dense<0xFF800000> : vector<1xf32>
    %25 = vector.multi_reduction <maximumf>, %24, %cst_13 [1, 2] : vector<1x1x64xf32> to vector<1xf32>
    %26 = vector.shape_cast %25 : vector<1xf32> to vector<1x1x1xf32>
    %27 = vector.extract %26[0, 0, 0] : f32 from vector<1x1x1xf32>
    %28 = vector.broadcast %27 : f32 to vector<1x64xf32>
    %29 = arith.cmpf oeq, %23, %28 : vector<1x64xf32>
    %c64_i32 = arith.constant 64 : i32
    %30 = vector.broadcast %c64_i32 : i32 to vector<1x64xi32>
    %31 = arith.select %29, %21, %30 : vector<1x64xi1>, vector<1x64xi32>
    %32 = vector.shape_cast %31 : vector<1x64xi32> to vector<1x1x64xi32>
    %cst_14 = arith.constant dense<2147483647> : vector<1xi32>
    %33 = vector.multi_reduction <minsi>, %32, %cst_14 [1, 2] : vector<1x1x64xi32> to vector<1xi32>
    %34 = vector.shape_cast %33 : vector<1xi32> to vector<1x1x1xi32>
    %35 = vector.extract %34[0, 0, 0] : i32 from vector<1x1x1xi32>
    %36 = vector.broadcast %35 : i32 to vector<1x64xi32>
    %37 = arith.cmpi eq, %21, %36 : vector<1x64xi32>
    %38 = arith.extui %37 : vector<1x64xi1> to vector<1x64xi32>
    %39 = arith.sitofp %38 : vector<1x64xi32> to vector<1x64xf32>
    %cst_15 = arith.constant dense<0.000000e+00> : vector<1x32xf32>
    %40 = tpu.matmul %39, %14, %cst_15 {dimension_numbers = #tpu.dot_dimension_numbers<[1], [0], [0], [1], [0, 0, 1, 1], [], []>} : vector<1x64xf32>, vector<64x32xf32>, vector<1x32xf32> -> vector<1x32xf32>
    %cst_16 = arith.constant dense<0.000000e+00> : vector<1x64xf32>
    %41 = tpu.matmul %40, %14, %cst_16 {dimension_numbers = #tpu.dot_dimension_numbers<[1], [1], [0], [0], [0, 0, 1, 0], [], []>} : vector<1x32xf32>, vector<64x32xf32>, vector<1x64xf32> -> vector<1x64xf32>
    %cst_17 = arith.constant 2.000000e+00 : f32
    %42 = vector.broadcast %cst_17 : f32 to vector<1x64xf32>
    %43 = arith.mulf %42, %41 : vector<1x64xf32>
    %cst_18 = arith.constant 2.000000e+00 : f32
    %44 = vector.broadcast %cst_18 : f32 to vector<1x64xf32>
    %45 = arith.subf %44, %43 : vector<1x64xf32>
    %cst_19 = arith.constant 0.000000e+00 : f32
    %46 = vector.broadcast %cst_19 : f32 to vector<1x64xf32>
    %47 = arith.maximumf %45, %46 : vector<1x64xf32>
    %cst_20 = arith.constant 0.000000e+00 : f32
    %48 = vector.broadcast %cst_20 : f32 to vector<1x64xf32>
    %49 = arith.subf %48, %47 : vector<1x64xf32>
    %cst_21 = arith.constant 1.000000e+00 : f32
    %50 = vector.broadcast %cst_21 : f32 to vector<1x64xf32>
    %51 = arith.mulf %49, %50 : vector<1x64xf32>
    %cst_22 = arith.constant -18.420681 : f32
    %52 = vector.broadcast %cst_22 : f32 to vector<1x64xf32>
    %53 = arith.maximumf %51, %52 : vector<1x64xf32>
    %54 = math.exp %53 : vector<1x64xf32>
    %55 = arith.mulf %22, %54 : vector<1x64xf32>
    %cst_23 = arith.constant 1.000000e+00 : f32
    %56 = vector.broadcast %cst_23 : f32 to vector<1x64xf32>
    %57 = arith.subf %56, %54 : vector<1x64xf32>
    %cst_24 = arith.constant 9.99999993E-9 : f32
    %58 = vector.broadcast %cst_24 : f32 to vector<1x64xf32>
    %59 = arith.maximumf %57, %58 : vector<1x64xf32>
    %60 = math.log %59 : vector<1x64xf32>
    %61 = arith.addf %20, %60 : vector<1x64xf32>
    %62 = math.exp %61 : vector<1x64xf32>
    %63 = arith.addf %61, %19 : vector<1x64xf32>
    %64 = vector.shape_cast %63 : vector<1x64xf32> to vector<1x1x64xf32>
    %cst_25 = arith.constant dense<0xFF800000> : vector<1xf32>
    %65 = vector.multi_reduction <maximumf>, %64, %cst_25 [1, 2] : vector<1x1x64xf32> to vector<1xf32>
    %66 = vector.shape_cast %65 : vector<1xf32> to vector<1x1x1xf32>
    %67 = vector.extract %66[0, 0, 0] : f32 from vector<1x1x1xf32>
    %68 = vector.broadcast %67 : f32 to vector<1x64xf32>
    %69 = arith.cmpf oeq, %63, %68 : vector<1x64xf32>
    %c64_i32_26 = arith.constant 64 : i32
    %70 = vector.broadcast %c64_i32_26 : i32 to vector<1x64xi32>
    %71 = arith.select %69, %21, %70 : vector<1x64xi1>, vector<1x64xi32>
    %72 = vector.shape_cast %71 : vector<1x64xi32> to vector<1x1x64xi32>
    %cst_27 = arith.constant dense<2147483647> : vector<1xi32>
    %73 = vector.multi_reduction <minsi>, %72, %cst_27 [1, 2] : vector<1x1x64xi32> to vector<1xi32>
    %74 = vector.shape_cast %73 : vector<1xi32> to vector<1x1x1xi32>
    %75 = vector.extract %74[0, 0, 0] : i32 from vector<1x1x1xi32>
    %76 = vector.broadcast %75 : i32 to vector<1x64xi32>
    %77 = arith.cmpi eq, %21, %76 : vector<1x64xi32>
    %78 = arith.extui %77 : vector<1x64xi1> to vector<1x64xi32>
    %79 = arith.sitofp %78 : vector<1x64xi32> to vector<1x64xf32>
    %cst_28 = arith.constant dense<0.000000e+00> : vector<1x32xf32>
    %80 = tpu.matmul %79, %14, %cst_28 {dimension_numbers = #tpu.dot_dimension_numbers<[1], [0], [0], [1], [0, 0, 1, 1], [], []>} : vector<1x64xf32>, vector<64x32xf32>, vector<1x32xf32> -> vector<1x32xf32>
    %cst_29 = arith.constant dense<0.000000e+00> : vector<1x64xf32>
    %81 = tpu.matmul %80, %14, %cst_29 {dimension_numbers = #tpu.dot_dimension_numbers<[1], [1], [0], [0], [0, 0, 1, 0], [], []>} : vector<1x32xf32>, vector<64x32xf32>, vector<1x64xf32> -> vector<1x64xf32>
    %cst_30 = arith.constant 2.000000e+00 : f32
    %82 = vector.broadcast %cst_30 : f32 to vector<1x64xf32>
    %83 = arith.mulf %82, %81 : vector<1x64xf32>
    %cst_31 = arith.constant 2.000000e+00 : f32
    %84 = vector.broadcast %cst_31 : f32 to vector<1x64xf32>
    %85 = arith.subf %84, %83 : vector<1x64xf32>
    %cst_32 = arith.constant 0.000000e+00 : f32
    %86 = vector.broadcast %cst_32 : f32 to vector<1x64xf32>
    %87 = arith.maximumf %85, %86 : vector<1x64xf32>
    %cst_33 = arith.constant 0.000000e+00 : f32
    %88 = vector.broadcast %cst_33 : f32 to vector<1x64xf32>
    %89 = arith.subf %88, %87 : vector<1x64xf32>
    %cst_34 = arith.constant 1.000000e+00 : f32
    %90 = vector.broadcast %cst_34 : f32 to vector<1x64xf32>
    %91 = arith.mulf %89, %90 : vector<1x64xf32>
    %cst_35 = arith.constant -18.420681 : f32
    %92 = vector.broadcast %cst_35 : f32 to vector<1x64xf32>
    %93 = arith.maximumf %91, %92 : vector<1x64xf32>
    %94 = math.exp %93 : vector<1x64xf32>
    %95 = arith.mulf %62, %94 : vector<1x64xf32>
    %cst_36 = arith.constant 1.000000e+00 : f32
    %96 = vector.broadcast %cst_36 : f32 to vector<1x64xf32>
    %97 = arith.subf %96, %94 : vector<1x64xf32>
    %cst_37 = arith.constant 9.99999993E-9 : f32
    %98 = vector.broadcast %cst_37 : f32 to vector<1x64xf32>
    %99 = arith.maximumf %97, %98 : vector<1x64xf32>
    %100 = math.log %99 : vector<1x64xf32>
    %101 = arith.addf %61, %100 : vector<1x64xf32>
    %102 = math.exp %101 : vector<1x64xf32>
    %103 = arith.addf %101, %19 : vector<1x64xf32>
    %104 = vector.shape_cast %103 : vector<1x64xf32> to vector<1x1x64xf32>
    %cst_38 = arith.constant dense<0xFF800000> : vector<1xf32>
    %105 = vector.multi_reduction <maximumf>, %104, %cst_38 [1, 2] : vector<1x1x64xf32> to vector<1xf32>
    %106 = vector.shape_cast %105 : vector<1xf32> to vector<1x1x1xf32>
    %107 = vector.extract %106[0, 0, 0] : f32 from vector<1x1x1xf32>
    %108 = vector.broadcast %107 : f32 to vector<1x64xf32>
    %109 = arith.cmpf oeq, %103, %108 : vector<1x64xf32>
    %c64_i32_39 = arith.constant 64 : i32
    %110 = vector.broadcast %c64_i32_39 : i32 to vector<1x64xi32>
    %111 = arith.select %109, %21, %110 : vector<1x64xi1>, vector<1x64xi32>
    %112 = vector.shape_cast %111 : vector<1x64xi32> to vector<1x1x64xi32>
    %cst_40 = arith.constant dense<2147483647> : vector<1xi32>
    %113 = vector.multi_reduction <minsi>, %112, %cst_40 [1, 2] : vector<1x1x64xi32> to vector<1xi32>
    %114 = vector.shape_cast %113 : vector<1xi32> to vector<1x1x1xi32>
    %115 = vector.extract %114[0, 0, 0] : i32 from vector<1x1x1xi32>
    %116 = vector.broadcast %115 : i32 to vector<1x64xi32>
    %117 = arith.cmpi eq, %21, %116 : vector<1x64xi32>
    %118 = arith.extui %117 : vector<1x64xi1> to vector<1x64xi32>
    %119 = arith.sitofp %118 : vector<1x64xi32> to vector<1x64xf32>
    %cst_41 = arith.constant dense<0.000000e+00> : vector<1x32xf32>
    %120 = tpu.matmul %119, %14, %cst_41 {dimension_numbers = #tpu.dot_dimension_numbers<[1], [0], [0], [1], [0, 0, 1, 1], [], []>} : vector<1x64xf32>, vector<64x32xf32>, vector<1x32xf32> -> vector<1x32xf32>
    %cst_42 = arith.constant dense<0.000000e+00> : vector<1x64xf32>
    %121 = tpu.matmul %120, %14, %cst_42 {dimension_numbers = #tpu.dot_dimension_numbers<[1], [1], [0], [0], [0, 0, 1, 0], [], []>} : vector<1x32xf32>, vector<64x32xf32>, vector<1x64xf32> -> vector<1x64xf32>
    %cst_43 = arith.constant 2.000000e+00 : f32
    %122 = vector.broadcast %cst_43 : f32 to vector<1x64xf32>
    %123 = arith.mulf %122, %121 : vector<1x64xf32>
    %cst_44 = arith.constant 2.000000e+00 : f32
    %124 = vector.broadcast %cst_44 : f32 to vector<1x64xf32>
    %125 = arith.subf %124, %123 : vector<1x64xf32>
    %cst_45 = arith.constant 0.000000e+00 : f32
    %126 = vector.broadcast %cst_45 : f32 to vector<1x64xf32>
    %127 = arith.maximumf %125, %126 : vector<1x64xf32>
    %cst_46 = arith.constant 0.000000e+00 : f32
    %128 = vector.broadcast %cst_46 : f32 to vector<1x64xf32>
    %129 = arith.subf %128, %127 : vector<1x64xf32>
    %cst_47 = arith.constant 1.000000e+00 : f32
    %130 = vector.broadcast %cst_47 : f32 to vector<1x64xf32>
    %131 = arith.mulf %129, %130 : vector<1x64xf32>
    %cst_48 = arith.constant -18.420681 : f32
    %132 = vector.broadcast %cst_48 : f32 to vector<1x64xf32>
    %133 = arith.maximumf %131, %132 : vector<1x64xf32>
    %134 = math.exp %133 : vector<1x64xf32>
    %135 = arith.mulf %102, %134 : vector<1x64xf32>
    %cst_49 = arith.constant 1.000000e+00 : f32
    %136 = vector.broadcast %cst_49 : f32 to vector<1x64xf32>
    %137 = arith.subf %136, %134 : vector<1x64xf32>
    %cst_50 = arith.constant 9.99999993E-9 : f32
    %138 = vector.broadcast %cst_50 : f32 to vector<1x64xf32>
    %139 = arith.maximumf %137, %138 : vector<1x64xf32>
    %140 = math.log %139 : vector<1x64xf32>
    %141 = arith.addf %101, %140 : vector<1x64xf32>
    %142 = math.exp %141 : vector<1x64xf32>
    %143 = arith.addf %141, %19 : vector<1x64xf32>
    %144 = vector.shape_cast %143 : vector<1x64xf32> to vector<1x1x64xf32>
    %cst_51 = arith.constant dense<0xFF800000> : vector<1xf32>
    %145 = vector.multi_reduction <maximumf>, %144, %cst_51 [1, 2] : vector<1x1x64xf32> to vector<1xf32>
    %146 = vector.shape_cast %145 : vector<1xf32> to vector<1x1x1xf32>
    %147 = vector.extract %146[0, 0, 0] : f32 from vector<1x1x1xf32>
    %148 = vector.broadcast %147 : f32 to vector<1x64xf32>
    %149 = arith.cmpf oeq, %143, %148 : vector<1x64xf32>
    %c64_i32_52 = arith.constant 64 : i32
    %150 = vector.broadcast %c64_i32_52 : i32 to vector<1x64xi32>
    %151 = arith.select %149, %21, %150 : vector<1x64xi1>, vector<1x64xi32>
    %152 = vector.shape_cast %151 : vector<1x64xi32> to vector<1x1x64xi32>
    %cst_53 = arith.constant dense<2147483647> : vector<1xi32>
    %153 = vector.multi_reduction <minsi>, %152, %cst_53 [1, 2] : vector<1x1x64xi32> to vector<1xi32>
    %154 = vector.shape_cast %153 : vector<1xi32> to vector<1x1x1xi32>
    %155 = vector.extract %154[0, 0, 0] : i32 from vector<1x1x1xi32>
    %156 = vector.broadcast %155 : i32 to vector<1x64xi32>
    %157 = arith.cmpi eq, %21, %156 : vector<1x64xi32>
    %158 = arith.extui %157 : vector<1x64xi1> to vector<1x64xi32>
    %159 = arith.sitofp %158 : vector<1x64xi32> to vector<1x64xf32>
    %cst_54 = arith.constant dense<0.000000e+00> : vector<1x32xf32>
    %160 = tpu.matmul %159, %14, %cst_54 {dimension_numbers = #tpu.dot_dimension_numbers<[1], [0], [0], [1], [0, 0, 1, 1], [], []>} : vector<1x64xf32>, vector<64x32xf32>, vector<1x32xf32> -> vector<1x32xf32>
    %cst_55 = arith.constant dense<0.000000e+00> : vector<1x64xf32>
    %161 = tpu.matmul %160, %14, %cst_55 {dimension_numbers = #tpu.dot_dimension_numbers<[1], [1], [0], [0], [0, 0, 1, 0], [], []>} : vector<1x32xf32>, vector<64x32xf32>, vector<1x64xf32> -> vector<1x64xf32>
    %cst_56 = arith.constant 2.000000e+00 : f32
    %162 = vector.broadcast %cst_56 : f32 to vector<1x64xf32>
    %163 = arith.mulf %162, %161 : vector<1x64xf32>
    %cst_57 = arith.constant 2.000000e+00 : f32
    %164 = vector.broadcast %cst_57 : f32 to vector<1x64xf32>
    %165 = arith.subf %164, %163 : vector<1x64xf32>
    %cst_58 = arith.constant 0.000000e+00 : f32
    %166 = vector.broadcast %cst_58 : f32 to vector<1x64xf32>
    %167 = arith.maximumf %165, %166 : vector<1x64xf32>
    %cst_59 = arith.constant 0.000000e+00 : f32
    %168 = vector.broadcast %cst_59 : f32 to vector<1x64xf32>
    %169 = arith.subf %168, %167 : vector<1x64xf32>
    %cst_60 = arith.constant 1.000000e+00 : f32
    %170 = vector.broadcast %cst_60 : f32 to vector<1x64xf32>
    %171 = arith.mulf %169, %170 : vector<1x64xf32>
    %cst_61 = arith.constant -18.420681 : f32
    %172 = vector.broadcast %cst_61 : f32 to vector<1x64xf32>
    %173 = arith.maximumf %171, %172 : vector<1x64xf32>
    %174 = math.exp %173 : vector<1x64xf32>
    %175 = arith.mulf %142, %174 : vector<1x64xf32>
    %176 = tpu.concatenate %55, %95, %135, %175 in 0 : vector<1x64xf32>, vector<1x64xf32>, vector<1x64xf32>, vector<1x64xf32> -> vector<4x64xf32>
    %177 = tpu.concatenate %22, %62, %102, %142 in 0 : vector<1x64xf32>, vector<1x64xf32>, vector<1x64xf32>, vector<1x64xf32> -> vector<4x64xf32>
    %c0_62 = arith.constant 0 : index
    %c0_63 = arith.constant 0 : index
    %c0_64 = arith.constant 0 : index
    %178 = vector.load %arg8[%c0_62, %c0_63, %c0_64] : memref<1x4x64xf32, #tpu.memory_space<vmem>>, vector<1x4x64xf32>
    %179 = vector.shape_cast %178 : vector<1x4x64xf32> to vector<4x64xf32>
    %180 = vector.shape_cast %176 : vector<4x64xf32> to vector<1x4x64xf32>
    tpu.vector_store %arg8[%c0_62, %c0_63, %c0_64], %180 {strides = array<i32>} : memref<1x4x64xf32, #tpu.memory_space<vmem>>, vector<1x4x64xf32>,
    %cst_65 = arith.constant dense<0.000000e+00> : vector<4xf32>
    %181 = vector.multi_reduction <add>, %176, %cst_65 [1] : vector<4x64xf32> to vector<4xf32>
    %182 = vector.shape_cast %181 : vector<4xf32> to vector<4x1xf32>
    %cst_66 = arith.constant dense<0.000000e+00> : vector<4xf32>
    %183 = vector.multi_reduction <add>, %177, %cst_66 [1] : vector<4x64xf32> to vector<4xf32>
    %184 = vector.shape_cast %183 : vector<4xf32> to vector<4x1xf32>
    %cst_67 = arith.constant 6.400000e+01 : f32
    %185 = vector.broadcast %cst_67 : f32 to vector<4x1xf32>
    %186 = arith.divf %184, %185 : vector<4x1xf32>
    %cst_68 = arith.constant 1.562500e-02 : f32
    %187 = vector.broadcast %cst_68 : f32 to vector<4x1xf32>
    %188 = arith.mulf %182, %187 : vector<4x1xf32>
    %cst_69 = arith.constant dense<0xFF800000> : vector<4xf32>
    %189 = vector.multi_reduction <maximumf>, %176, %cst_69 [1] : vector<4x64xf32> to vector<4xf32>
    %190 = vector.shape_cast %189 : vector<4xf32> to vector<4x1xf32>
    %191 = tpu.concatenate %186, %188, %190 in 1 : vector<4x1xf32>, vector<4x1xf32>, vector<4x1xf32> -> vector<4x3xf32>
    %c0_70 = arith.constant 0 : index
    %c0_71 = arith.constant 0 : index
    %c0_72 = arith.constant 0 : index
    %192 = vector.load %arg9[%c0_70, %c0_71, %c0_72] : memref<1x4x3xf32, #tpu.memory_space<vmem>>, vector<1x4x3xf32>
    %193 = vector.shape_cast %192 : vector<1x4x3xf32> to vector<4x3xf32>
    %194 = vector.shape_cast %191 : vector<4x3xf32> to vector<1x4x3xf32>
    tpu.vector_store %arg9[%c0_70, %c0_71, %c0_72], %194 {strides = array<i32>} : memref<1x4x3xf32, #tpu.memory_space<vmem>>, vector<1x4x3xf32>,
    %cst_73 = arith.constant dense<0.000000e+00> : vector<4x32xf32>
    %195 = tpu.matmul %176, %1, %cst_73 {dimension_numbers = #tpu.dot_dimension_numbers<[1], [0], [0], [1], [0, 0, 1, 1], [], []>} : vector<4x64xf32>, vector<64x32xf32>, vector<4x32xf32> -> vector<4x32xf32>
    %cst_74 = arith.constant 9.99999993E-9 : f32
    %196 = vector.broadcast %cst_74 : f32 to vector<4x1xf32>
    %197 = arith.maximumf %182, %196 : vector<4x1xf32>
    %198 = vector.broadcast %197 : vector<4x1xf32> to vector<4x32xf32>
    %199 = arith.divf %195, %198 : vector<4x32xf32>
    %c0_75 = arith.constant 0 : index
    %c0_76 = arith.constant 0 : index
    %200 = vector.load %arg5[%c0_75, %c0_76] : memref<32x16xf32, #tpu.memory_space<vmem>>, vector<32x16xf32>
    %cst_77 = arith.constant dense<0.000000e+00> : vector<4x16xf32>
    %201 = tpu.matmul %199, %200, %cst_77 {dimension_numbers = #tpu.dot_dimension_numbers<[1], [0], [0], [1], [0, 0, 1, 1], [], []>} : vector<4x32xf32>, vector<32x16xf32>, vector<4x16xf32> -> vector<4x16xf32>
    %c0_78 = arith.constant 0 : index
    %c0_79 = arith.constant 0 : index
    %202 = vector.load %arg6[%c0_78, %c0_79] : memref<1x16xf32, #tpu.memory_space<vmem>>, vector<1x16xf32>
    %203 = vector.broadcast %202 : vector<1x16xf32> to vector<4x16xf32>
    %204 = arith.addf %201, %203 : vector<4x16xf32>
    %c0_80 = arith.constant 0 : index
    %c0_81 = arith.constant 0 : index
    %c0_82 = arith.constant 0 : index
    %205 = vector.load %arg7[%c0_80, %c0_81, %c0_82] : memref<1x4x16xf32, #tpu.memory_space<vmem>>, vector<1x4x16xf32>
    %206 = vector.shape_cast %205 : vector<1x4x16xf32> to vector<4x16xf32>
    %207 = vector.shape_cast %204 : vector<4x16xf32> to vector<1x4x16xf32>
    tpu.vector_store %arg7[%c0_80, %c0_81, %c0_82], %207 {strides = array<i32>} : memref<1x4x16xf32, #tpu.memory_space<vmem>>, vector<1x4x16xf32>,
    return
  }
  func.func @transform_0(%arg0: i32) -> (i32, i32, i32) {
    %c0_i32 = arith.constant 0 : i32
    %c0_i32_0 = arith.constant 0 : i32
    %c0_i32_1 = arith.constant 0 : i32
    return %arg0, %c0_i32, %c0_i32_0 : i32, i32, i32
  }
  func.func @transform_1(%arg0: i32) -> (i32, i32, i32) {
    %c0_i32 = arith.constant 0 : i32
    %c0_i32_0 = arith.constant 0 : i32
    %c0_i32_1 = arith.constant 0 : i32
    return %arg0, %c0_i32, %c0_i32_0 : i32, i32, i32
  }
  func.func @transform_2(%arg0: i32) -> (i32, i32) {
    %c0_i32 = arith.constant 0 : i32
    %c0_i32_0 = arith.constant 0 : i32
    %c0_i32_1 = arith.constant 0 : i32
    return %c0_i32, %c0_i32_0 : i32, i32
  }
  func.func @transform_3(%arg0: i32) -> (i32, i32) {
    %c0_i32 = arith.constant 0 : i32
    %c0_i32_0 = arith.constant 0 : i32
    %c0_i32_1 = arith.constant 0 : i32
    return %c0_i32, %c0_i32_0 : i32, i32
  }
  func.func @transform_4(%arg0: i32) -> (i32, i32) {
    %c0_i32 = arith.constant 0 : i32
    %c0_i32_0 = arith.constant 0 : i32
    %c0_i32_1 = arith.constant 0 : i32
    return %c0_i32, %c0_i32_0 : i32, i32
  }
  func.func @transform_5(%arg0: i32) -> (i32, i32) {
    %c0_i32 = arith.constant 0 : i32
    %c0_i32_0 = arith.constant 0 : i32
    %c0_i32_1 = arith.constant 0 : i32
    return %c0_i32, %c0_i32_0 : i32, i32
  }
  func.func @transform_6(%arg0: i32) -> (i32, i32, i32) {
    %c0_i32 = arith.constant 0 : i32
    %c0_i32_0 = arith.constant 0 : i32
    %c0_i32_1 = arith.constant 0 : i32
    return %arg0, %c0_i32, %c0_i32_0 : i32, i32, i32
  }
  func.func @transform_7(%arg0: i32) -> (i32, i32, i32) {
    %c0_i32 = arith.constant 0 : i32
    %c0_i32_0 = arith.constant 0 : i32
    %c0_i32_1 = arith.constant 0 : i32
    return %arg0, %c0_i32, %c0_i32_0 : i32, i32, i32
  }
  func.func @transform_8(%arg0: i32) -> (i32, i32, i32) {
    %c0_i32 = arith.constant 0 : i32
    %c0_i32_0 = arith.constant 0 : i32
    %c0_i32_1 = arith.constant 0 : i32
    return %arg0, %c0_i32, %c0_i32_0 : i32, i32, i32
  }
}

</mosaic_0001>

<bundles_post_ra>
// kernel: tpu_custom_call.1
= control target key start
LH: loop header
LB: loop body
LE: loop exit
PB: predicated region body
PF: predicated region fallthrough
CT: control target
= control target key end

     0   :  { %s2150_s0 = inlined_call_operand.vmem [shape: f32[2,64,32], index: 0, kind: input, shape index: {}]   ;;  %s2151_s1 = inlined_call_operand.vmem [shape: f32[2,1,64], index: 1, kind: input, shape index: {}]   ;;  %s2152_s2 = inlined_call_operand.vmem [shape: f32[32,32], index: 2, kind: input, shape index: {}]   ;;  %s2153_s3 = inlined_call_operand.vmem [shape: f32[1,32], index: 3, kind: input, shape index: {}]   ;;  %s2154_s4 = inlined_call_operand.vmem [shape: f32[32,16], index: 4, kind: input, shape index: {}]   ;;  %s2155_s5 = inlined_call_operand.vmem [shape: f32[1,16], index: 5, kind: input, shape index: {}]   ;;  %s2156_s6 = inlined_call_operand.hbm [shape: f32[2,4,16], index: 6, kind: output, shape index: {0}]   ;;  %s2157_s7 = inlined_call_operand.hbm [shape: f32[2,4,64], index: 7, kind: output, shape index: {1}]   ;;  %s2158_s8 = inlined_call_operand.vmem [shape: f32[2,4,3], index: 8, kind: output, shape index: {2}]  }
   0x1   :  { %2160 = sst [smem:[#allocation8_spill]] %s2150_s0 }
   0x2   :  { %2161 = sst [smem:[#allocation9_spill]] %s2151_s1 }
   0x3   :  { %14 = vsyncpa [#allocation3], 0 }
   0x4   :  { %16 = vsyncpa [#allocation3 + $0x1], 0 }
   0x5   :  { %17 = vsyncpa [#allocation5], 0 }
   0x6   :  { %19 = vsyncpa [#allocation5 + $0x1], 0  ;;  %s1600_s27 = smov 0   ;;  %s1602_s28 = smov 0  }
   0x7   :  { %s1604_s29 = smov 0   ;;  %s1606_s30 = smov 0  }
   0x8 LB: > { %s1621_s9 = sadd.s32 4294967295, %s1551_s30   ;;  %s1281_s10 = sadd.s32 4294967294, %s1551_s30   ;;  %s1551_s30 = sphi %s1606_s30, %s2182_s30   ;;  %s1547_s29 = sphi %s1604_s29, %s2181_s29   ;;  %s1543_s28 = sphi %s1602_s28, %s2180_s28   ;;  %s1539_s27 = sphi %s1600_s27, %s2179_s27  }
   0x9   : > { %s1625_s11 = sadd.s32 1, %s1551_s30   ;;  %s168_s12 = sadd.s32 1, %s1547_s29 }
   0xa   : > { %s165_s13 = ssub.s32 %s1551_s30, %s1625_s11  ;;  %p178_p0 = scmp.ne.s32.totalorder %s1547_s29, %s1543_s28 }
   0xb   : > { %p166_p1 = scmp.eq.s32.totalorder %s165_s13, 0  ;;  %p179_p2 = scmp.eq.s32.totalorder %s1621_s9, 1 }
   0xc   : > { %p184_p3 = scmp.ne.s32.totalorder %s1543_s28, %s1539_s27  ;;  %p185_p4 = scmp.eq.s32.totalorder %s1281_s10, 1 }
   0xd   : > { %s1636_s14 = scalar_select %p166_p1, %s1547_s29, %s168_s12  }
   0xe   : > { %p1638_p5 = por %p179_p2, %p178_p0  ;;  %p1642_p6 = por %p185_p4, %p184_p3 }
   0xf   : > { %p1284_p7 = scmp.ge.s32.totalorder %s1551_s30, 1  ;;  %p281_p8 = scmp.lt.s32.totalorder %s1551_s30, 3 }
  0x11   : > { %p282_p9 = pnand %p1284_p7, %p281_p8 }
  0x12   : > { %p327_p10 = scmp.lt.s32.totalorder (!%p282_p9), %s1621_s9, 1  ;;  %s2164_s1 = sld [smem:[#allocation9_spill]] (!%p282_p9) }
  0x13   : > { %285 = sbr.rel (%p282_p9) target bundleno = 3442 (0xd72), region = 44  ;;  %s2165_s0 = sld [smem:[#allocation8_spill]] (!%p282_p9) }
  0x14   : > { %s2067_s18 = sand.u32 (!%p282_p9), 1, %s1543_s28  }
  0x18   : > { %v350_v0 = vld [vmem:[%s2152_s2 + $0x18] sm:$0xff]  ;;  %v349_v1 = vld [vmem:[%s2152_s2 + $0x10] sm:$0xff]  ;;  %v348_v2 = vld [vmem:[%s2152_s2 + $0x8] sm:$0xff]  ;;  %s1659_s23 = scalar_select %p327_p10, %s1621_s9, 1  ;;  %vm355_vm0 = vcmask 261120   ;;  %vm556_vm1 = vcmask 516096   ;;  %v553_v37 = vlaneseq }
  0x19   : > { %392 = vmatpush.msra.mxu0 %v350_v0  ;;  %v347_v3 = vld [vmem:[%s2152_s2] sm:$0xff] }
  0x1a   : > { %s1350_s26 = sshll.u32 %s1659_s23, 6  ;;  %s334_s13 = scalar_lea.vmem %s2164_s1, %s1659_s23  ;;  %v1413_v30 = vld [vmem:[%s2153_s3] ss:$0 sm:$0xff]  ;;  %v1733_v40 = vand.u32 127, %v553_v37 }
  0x1b   : > { %393 = vmatpush.msra.mxu0 %v349_v1  ;;  %s1672_s19 = scalar_lea.vmem %s2165_s0, %s1350_s26  ;;  %v549_v4 = vld [vmem:[%s334_s13] sm:$0x1] }
  0x1c   : > { %v1675_v5 = vld [vmem:[%s1672_s19] sm:$0xff]  ;;  %v550_v6 = vmax.f32 %v549_v4, 1e-08  ;;  %v1680_v7 = vld [vmem:[%s1672_s19 + $0x8] sm:$0xff]  ;;  %v1689_v11 = vld [vmem:[%s1672_s19 + $0x10] sm:$0xff] }
  0x1d   : > { %394 = vmatpush.msra.mxu0 %v348_v2  ;;  %v1694_v12 = vld [vmem:[%s1672_s19 + $0x18] sm:$0xff]  ;;  %v1699_v13 = vld [vmem:[%s1672_s19 + $0x20] sm:$0xff]  ;;  %v1704_v14 = vld [vmem:[%s1672_s19 + $0x28] sm:$0xff] }
  0x1e   : > { %1415 = vlog2.f32 %v550_v6  ;;  %v1709_v15 = vld [vmem:[%s1672_s19 + $0x30] sm:$0xff]  ;;  %v1714_v28 = vld [vmem:[%s1672_s19 + $0x38] sm:$0xff]  ;;  %s2159_s19 = sshll.u32 %s2067_s18, 2 }
  0x1f   : > { %395 = vmatpush.msra.mxu0 %v347_v3  ;;  %s2077_s20 = scalar_lea.vmem [#allocation4], %s2159_s19 }
  0x20   : > { %1290 = vmatmul.msk.f32.vlgmr.msra.gmra.mxu0 %vm355_vm0, %v1675_v5 }
  0x24   : > { %v1416_v8 = vpop.eup %1415 }
  0x25   : > { %v1682_v9 = vmul.f32 0.6931472, %v1416_v8 }
  0x27   : > { %v557_v10 = vsel %vm556_vm1, %v1682_v9, -inf }
  0x28   : > { %1291 = vmatmul.msk.f32.gmra.mxu0 %vm355_vm0, %v1680_v7  ;;  %558 = vmax.xlane.f32.xlu0 %v557_v10 }
  0x30   : > { %1292 = vmatmul.msk.f32.gmra.mxu0 %vm355_vm0, %v1689_v11 }
  0x38   : > { %1293 = vmatmul.msk.f32.gmra.mxu0 %vm355_vm0, %v1694_v12 }
  0x40   : > { %1294 = vmatmul.msk.f32.gmra.mxu0 %vm355_vm0, %v1699_v13 }
  0x48   : > { %1295 = vmatmul.msk.f32.gmra.mxu0 %vm355_vm0, %v1704_v14 }
  0x50   : > { %1296 = vmatmul.msk.f32.gmra.mxu0 %vm355_vm0, %v1709_v15 }
  0x58   : > { %1297 = vmatmul.msk.f32.gmra.mxu0 %vm355_vm0, %v1714_v28 }
  0x9b   : > { %v559_v16 = vpop.xlane.xlu0 %558 }
  0x9c   : > { %v560_v18 = vrot.slane %v559_v16, 4 }
  0x9d   : > { %v397_v17 = vpop.f32.mrf.mxu0 }
  0x9e   : > { %v561_v19 = vmax.f32 %v559_v16, %v560_v18  ;;  %v1760_v0 = vadd.f32 %v1413_v30, %v397_v17 }
  0xa0   : > { %v562_v20 = vrot.slane %v561_v19, 2  ;;  %v421_v2 = vmul.f32 %v1760_v0, %v1760_v0 }
  0xa2   : > { %v563_v21 = vmax.f32 %v561_v19, %v562_v20  ;;  %v429_v3 = vsel %vm355_vm0, %v421_v2, 0.0 }
  0xa4   : > { %v564_v23 = vrot.slane %v563_v21, 1 }
  0xa5   : > { %v400_v22 = vpop.f32.mrf.mxu0 }
  0xa6   : > { %v565_v24 = vmax.f32 %v563_v21, %v564_v23  ;;  %v1745_v50 = vadd.f32 %v1413_v30, %v400_v22 }
  0xa8   : > { %1351 = vpush %v565_v24  ;;  %v422_v52 = vmul.f32 %v1745_v50, %v1745_v50 }
  0xaa   : > { %v432_v53 = vsel %vm355_vm0, %v422_v52, 0.0 }
  0xad   : > { %v403_v25 = vpop.f32.mrf.mxu0 }
  0xae   : > { %v1730_v38 = vadd.f32 %v1413_v30, %v403_v25 }
  0xb0   : > { %v423_v42 = vmul.f32 %v1730_v38, %v1730_v38 }
  0xb2   : > { %v435_v45 = vsel %vm355_vm0, %v423_v42, 0.0 }
  0xb5   : > { %v406_v26 = vpop.f32.mrf.mxu0 }
  0xb6   : > { %v1756_v62 = vadd.f32 %v1413_v30, %v406_v26 }
  0xb8   : > { %v424_v63 = vmul.f32 %v1756_v62, %v1756_v62 }
  0xba   : > { %v438_v1 = vsel %vm355_vm0, %v424_v63, 0.0 }
  0xbd   : > { %v409_v27 = vpop.f32.mrf.mxu0 }
  0xbe   : > { %v1741_v47 = vadd.f32 %v1413_v30, %v409_v27 }
  0xc0   : > { %v425_v49 = vmul.f32 %v1741_v47, %v1741_v47 }
  0xc2   : > { %v441_v51 = vsel %vm355_vm0, %v425_v49, 0.0 }
  0xc5   : > { %v412_v29 = vpop.f32.mrf.mxu0 }
  0xc6   : > { %v1723_v33 = vadd.f32 %v1413_v30, %v412_v29 }
  0xc8   : > { %v426_v36 = vmul.f32 %v1723_v33, %v1723_v33 }
  0xca   : > { %v444_v39 = vsel %vm355_vm0, %v426_v36, 0.0 }
  0xcd   : > { %v415_v31 = vpop.f32.mrf.mxu0 }
  0xce   : > { %v1721_v32 = vadd.f32 %v1413_v30, %v415_v31 }
  0xd0   : > { %v427_v34 = vmul.f32 %v1721_v32, %v1721_v32 }
  0xd2   : > { %v447_v35 = vsel %vm355_vm0, %v427_v34, 0.0 }
  0xd3   : > { %448 = vadd.xlane.f32.xlu2 %v447_v35 }
  0xd5   : > { %v418_v55 = vpop.f32.mrf.mxu0 }
  0xd6   : > { %v1751_v58 = vadd.f32 %v1413_v30, %v418_v55 }
  0xd8   : > { %v428_v60 = vmul.f32 %v1751_v58, %v1751_v58 }
  0xd9   : > { %s1352_s22 = spop %1351 }
  0xda   : > { %v567_v41 = vstv %s1352_s22  ;;  %v450_v61 = vsel %vm355_vm0, %v428_v60, 0.0 }
  0xdb   : > { %445 = vadd.xlane.f32.xlu2 %v444_v39  ;;  %vm568_vm2 = vcmp.eq.f32.partialorder %v1682_v9, %v567_v41 }
  0xdc   : > { %v569_v43 = vsel %vm568_vm2, %v1733_v40, 64 }
  0xdd   : > { %v570_v44 = vsel %vm556_vm1, %v569_v43, 2147483647 }
  0xde   : > { %v572_v46 = vshra.s32 %v570_v44, 16  ;;  %v571_v54 = vand.u32 65535, %v570_v44 }
  0xe0   : > { %v574_v48 = vcvt.s32.f32 %v572_v46  ;;  %v573_v57 = vcvt.s32.f32 %v571_v54 }
  0xe2   : > { %575 = vmin.xlane.f32.xlu0 %v574_v48 }
  0xe3   : > { %436 = vadd.xlane.f32.xlu2 %v435_v45 }
  0xea   : > { %442 = vadd.xlane.f32.xlu0 %v441_v51 }
  0xf2   : > { %433 = vadd.xlane.f32.xlu0 %v432_v53 }
 0x146   : > { %v449_v4 = vpop.xlane.xlu2 %448 }
 0x147   : > { %v1766_v10 = vmax.f32 %v449_v4, 1e-24 }
 0x149   : > { %1417 = vrsqrt.f32 %v1766_v10  ;;  %vm527_vm7 = vweird.f32 %v1766_v10 }
 0x14e   : > { %v446_v6 = vpop.xlane.xlu2 %445 }
 0x14f   : > { %v1768_v16 = vmax.f32 %v446_v6, 1e-24  ;;  %v1777_v26 = vpop.eup %1417 }
 0x150   : > { %v522_v31 = vmul.f32 %v1777_v26, %v1766_v10  ;;  %vm528_vm8 = vweird.f32 %v1777_v26 }
 0x151   : > { %1419 = vrsqrt.f32 %v1768_v16  ;;  %vm517_vm11 = vweird.f32 %v1768_v16  ;;  %vm1813_vm12 = vmor %vm527_vm7, %vm528_vm8 }
 0x152   : > { %v523_v42 = vmul.f32 %v1777_v26, %v522_v31 }
 0x154   : > { %v524_v51 = vmul.f32 0.5, %v523_v42 }
 0x155   : > { %v576_v56 = vpop.xlane.xlu0 %575 }
 0x156   : > { %vm577_vm3 = vcmp.eq.f32.partialorder %v574_v48, %v576_v56  ;;  %v582_v18 = vcvt.f32.s32 %v576_v56  ;;  %v437_v19 = vpop.xlane.xlu2 %436  ;;  %v525_v63 = vsub.f32 1.5, %v524_v51 }
 0x157   : > { %v578_v59 = vsel %vm577_vm3, %v573_v57, inf  ;;  %v1774_v24 = vmax.f32 %v437_v19, 1e-24  ;;  %v1781_v30 = vpop.eup %1419 }
 0x158   : > { %579 = vmin.xlane.f32.xlu1 %v578_v59  ;;  %v583_v21 = vshll.u32 %v582_v18, 16  ;;  %v512_v37 = vmul.f32 %v1781_v30, %v1768_v16  ;;  %v526_v18 = vmul.f32 %v1777_v26, %v525_v63  ;;  %vm518_vm13 = vweird.f32 %v1781_v30 }
 0x159   : > { %vm1835_vm3 = vmor %vm517_vm11, %vm518_vm13 }
 0x15a   : > { %v513_v46 = vmul.f32 %v1781_v30, %v512_v37 }
 0x15c   : > { %v514_v57 = vmul.f32 0.5, %v513_v46 }
 0x15d   : > { %v443_v8 = vpop.xlane.xlu0 %442 }
 0x15e   : > { %v1771_v17 = vmax.f32 %v443_v8, 1e-24  ;;  %v515_v4 = vsub.f32 1.5, %v514_v57 }
 0x160   : > { %451 = vadd.xlane.f32.xlu1 %v450_v61  ;;  %1421 = vrsqrt.f32 %v1771_v17  ;;  %vm507_vm14 = vweird.f32 %v1771_v17 }
 0x161   : > { %1423 = vrsqrt.f32 %v1774_v24 }
 0x165   : > { %v434_v23 = vpop.xlane.xlu0 %433 }
 0x166   : > { %v1779_v27 = vmax.f32 %v434_v23, 1e-24  ;;  %v1786_v36 = vpop.eup %1421 }
 0x167   : > { %v502_v43 = vmul.f32 %v1786_v36, %v1771_v17  ;;  %v1794_v45 = vpop.eup %1423  ;;  %vm508_vm2 = vweird.f32 %v1786_v36 }
 0x168   : > { %439 = vadd.xlane.f32.xlu1 %v438_v1  ;;  %1425 = vrsqrt.f32 %v1779_v27  ;;  %v482_v52 = vmul.f32 %v1794_v45, %v1774_v24  ;;  %vm477_vm7 = vweird.f32 %v1779_v27 }
 0x169   : > { %v503_v53 = vmul.f32 %v1786_v36, %v502_v43 }
 0x16a   : > { %v483_v1 = vmul.f32 %v1794_v45, %v482_v52 }
 0x16b   : > { %v504_v2 = vmul.f32 0.5, %v503_v53 }
 0x16d   : > { %v505_v10 = vsub.f32 1.5, %v504_v2  ;;  %v1553_v2 = vmov 0.0  }
 0x16e   : > { %v1797_v49 = vpop.eup %1425 }
 0x16f   : > { %v472_v60 = vmul.f32 %v1797_v49, %v1779_v27  ;;  %v506_v43 = vmul.f32 %v1786_v36, %v505_v10  ;;  %vm478_vm8 = vweird.f32 %v1797_v49 }
 0x170   : > { %430 = vadd.xlane.f32.xlu1 %v429_v3  ;;  %vm1887_vm11 = vmor %vm477_vm7, %vm478_vm8 }
 0x171   : > { %v473_v6 = vmul.f32 %v1797_v49, %v472_v60 }
 0x1cb   : > { %v580_v20 = vpop.xlane.xlu1 %579 }
 0x1cc   : > { %v581_v22 = vcvt.f32.s32 %v580_v20  ;;  %v484_v20 = vmul.f32 0.5, %v483_v1 }
 0x1ce   : > { %v584_v25 = vadd.s32 %v583_v21, %v581_v22  ;;  %v485_v42 = vsub.f32 1.5, %v484_v20 }
 0x1d0   : > { %v585_v29 = vrot.slane %v584_v25, 4 }
 0x1d2   : > { %vm586_vm4 = vcmp.lt.s32.totalorder %v584_v25, %v585_v29 }
 0x1d3   : > { %v452_v34 = vpop.xlane.xlu1 %451  ;;  %v587_v35 = vsel %vm586_vm4, %v584_v25, %v585_v29  ;;  %v516_v25 = vmul.f32 %v1781_v30, %v515_v4  ;;  %vm487_vm4 = vweird.f32 %v1774_v24 }
 0x1d4   : > { %v460_v39 = vmax.f32 %v452_v34, 1e-24  ;;  %v588_v41 = vrot.slane %v587_v35, 2  ;;  %v474_v34 = vmul.f32 0.5, %v473_v6 }
 0x1d6   : > { %1427 = vrsqrt.f32 %v460_v39  ;;  %vm589_vm5 = vcmp.lt.s32.totalorder %v587_v35, %v588_v41  ;;  %vm537_vm9 = vweird.f32 %v460_v39  ;;  %v475_v51 = vsub.f32 1.5, %v474_v34 }
 0x1d7   : > { %v590_v44 = vsel %vm589_vm5, %v587_v35, %v588_v41  ;;  %vm1846_vm5 = vmor %vm507_vm14, %vm508_vm2 }
 0x1d8   : > { %v591_v48 = vrot.slane %v590_v44, 1  ;;  %v510_v17 = vsel %vm1846_vm5, %v1786_v36, %v506_v43  ;;  %v476_v36 = vmul.f32 %v1797_v49, %v475_v51 }
 0x1d9   : > { %v1895_v24 = vmul.f32 %v510_v17, %v1741_v47 }
 0x1da   : > { %vm592_vm6 = vcmp.lt.s32.totalorder %v590_v44, %v591_v48 }
 0x1db   : > { %v440_v54 = vpop.xlane.xlu1 %439  ;;  %v593_v55 = vsel %vm592_vm6, %v590_v44, %v591_v48  ;;  %v520_v48 = vsel %vm1835_vm3, %v1781_v30, %v516_v25  ;;  %vm488_vm6 = vweird.f32 %v1794_v45  ;;  %vm599_vm3 = vcmask 523264  }
 0x1dc   : > { %v1428_v56 = vpop.eup %1427  ;;  %v1802_v59 = vmax.f32 %v440_v54, 1e-24  ;;  %1353 = vpush %v593_v55  ;;  %v1873_v54 = vmul.f32 %v520_v48, %v1723_v33 }
 0x1dd   : > { %v532_v61 = vmul.f32 %v1428_v56, %v460_v39  ;;  %vm538_vm10 = vweird.f32 %v1428_v56  ;;  %v530_v39 = vsel %vm1813_vm12, %v1777_v26, %v526_v18 }
 0x1de   : > { %1429 = vrsqrt.f32 %v1802_v59  ;;  %vm1820_vm15 = vmor %vm537_vm9, %vm538_vm10  ;;  %v1858_v53 = vmul.f32 %v530_v39, %v1721_v32  ;;  %vm497_vm12 = vweird.f32 %v1802_v59 }
 0x1df   : > { %v533_v3 = vmul.f32 %v1428_v56, %v532_v61  ;;  %vm1879_vm10 = vmor %vm487_vm4, %vm488_vm6 }
 0x1e1   : > { %v534_v8 = vmul.f32 0.5, %v533_v3 }
 0x1e3   : > { %v535_v21 = vsub.f32 1.5, %v534_v8  ;;  %v431_v22 = vpop.xlane.xlu1 %430 }
 0x1e4   : > { %v1430_v23 = vpop.eup %1429  ;;  %v1824_v31 = vmax.f32 %v431_v22, 1e-24 }
 0x1e5   : > { %v536_v35 = vmul.f32 %v1428_v56, %v535_v21  ;;  %v492_v37 = vmul.f32 %v1430_v23, %v1802_v59  ;;  %vm498_vm9 = vweird.f32 %v1430_v23  ;;  %v480_v59 = vsel %vm1887_vm11, %v1797_v49, %v476_v36 }
 0x1e6   : > { %1431 = vrsqrt.f32 %v1824_v31  ;;  %vm499_vm13 = vmor %vm497_vm12, %vm498_vm9 }
 0x1e7   : > { %v540_v44 = vsel %vm1820_vm15, %v1428_v56, %v536_v35  ;;  %v493_v46 = vmul.f32 %v1430_v23, %v492_v37  ;;  %vm467_vm15 = vweird.f32 %v1824_v31 }
 0x1e8   : > { %v1851_v16 = vmul.f32 %v540_v44, %v1751_v58  ;;  %v486_v58 = vmul.f32 %v1794_v45, %v485_v42 }
 0x1e9   : > { %v494_v52 = vmul.f32 0.5, %v493_v46 }
 0x1ea   : > { %611 = vmatpush.msra.mxu1 %v1851_v16  ;;  %1300 = vmatpush.xpose.msk.msra.mxu2 %vm355_vm0, %v1851_v16  ;;  %v490_v27 = vsel %vm1879_vm10, %v1794_v45, %v486_v58 }
 0x1eb   : > { %v495_v30 = vsub.f32 1.5, %v494_v52  ;;  %738 = vmatpush.msra.mxu3 %v1851_v16  ;;  %1333 = vmatpush.xpose.msk.msrb.mxu0 %vm355_vm0, %v1851_v16  ;;  %v1915_v45 = vmul.f32 %v490_v27, %v1730_v38 }
 0x1ec   : > { %v1432_v32 = vpop.eup %1431  ;;  %612 = vmatpush.msra.mxu1 %v1858_v53 }
 0x1ed   : > { %v496_v33 = vmul.f32 %v1430_v23, %v495_v30  ;;  %v462_v57 = vmul.f32 %v1432_v32, %v1824_v31  ;;  %739 = vmatpush.msra.mxu3 %v1858_v53  ;;  %vm468_vm14 = vweird.f32 %v1432_v32 }
 0x1ee   : > { %613 = vmatpush.msra.mxu1 %v1873_v54  ;;  %1301 = vmatpush.xpose.msk.msra.mxu2 %vm355_vm0, %v1858_v53  ;;  %vm469_vm2 = vmor %vm467_vm15, %vm468_vm14 }
 0x1ef   : > { %v500_v60 = vsel %vm499_vm13, %v1430_v23, %v496_v33  ;;  %v463_v61 = vmul.f32 %v1432_v32, %v462_v57  ;;  %740 = vmatpush.msra.mxu3 %v1873_v54  ;;  %1334 = vmatpush.xpose.msk.msrb.mxu0 %vm355_vm0, %v1858_v53 }
 0x1f0   : > { %v1907_v47 = vmul.f32 %v500_v60, %v1756_v62  ;;  %614 = vmatpush.msra.mxu1 %v1895_v24  ;;  %v1924_v62 = vmul.f32 %v480_v59, %v1745_v50 }
 0x1f1   : > { %v464_v63 = vmul.f32 0.5, %v463_v61  ;;  %741 = vmatpush.msra.mxu3 %v1895_v24 }
 0x1f2   : > { %615 = vmatpush.msra.mxu1 %v1907_v47  ;;  %1302 = vmatpush.xpose.msk.msra.mxu2 %vm355_vm0, %v1873_v54 }
 0x1f3   : > { %v465_v1 = vsub.f32 1.5, %v464_v63  ;;  %742 = vmatpush.msra.mxu3 %v1907_v47  ;;  %1335 = vmatpush.xpose.msk.msrb.mxu0 %vm355_vm0, %v1873_v54 }
 0x1f4   : > { %616 = vmatpush.msra.mxu1 %v1915_v45 }
 0x1f5   : > { %v466_v49 = vmul.f32 %v1432_v32, %v465_v1  ;;  %743 = vmatpush.msra.mxu3 %v1915_v45 }
 0x1f6   : > { %617 = vmatpush.msra.mxu1 %v1924_v62  ;;  %1303 = vmatpush.xpose.msk.msra.mxu2 %vm355_vm0, %v1895_v24 }
 0x1f7   : > { %v470_v38 = vsel %vm469_vm2, %v1432_v32, %v466_v49  ;;  %744 = vmatpush.msra.mxu3 %v1924_v62  ;;  %1336 = vmatpush.xpose.msk.msrb.mxu0 %vm355_vm0, %v1895_v24 }
 0x1f8   : > { %v1936_v50 = vmul.f32 %v470_v38, %v1760_v0 }
 0x1fa   : > { %618 = vmatpush.msra.mxu1 %v1936_v50  ;;  %1304 = vmatpush.xpose.msk.msra.mxu2 %vm355_vm0, %v1907_v47 }
 0x1fb   : > { %745 = vmatpush.msra.mxu3 %v1936_v50  ;;  %1337 = vmatpush.xpose.msk.msrb.mxu0 %vm355_vm0, %v1907_v47 }
 0x1fc   : > { %1311 = vmatpush.xpose.msk.msrb.mxu1 %vm355_vm0, %v1851_v16 }
 0x1fd   : > { %842 = vmatpush.msrb.mxu3 %v1851_v16 }
 0x1fe   : > { %1305 = vmatpush.xpose.msk.msra.mxu2 %vm355_vm0, %v1915_v45 }
 0x1ff   : > { %843 = vmatpush.msrb.mxu3 %v1858_v53  ;;  %1338 = vmatpush.xpose.msk.msrb.mxu0 %vm355_vm0, %v1915_v45 }
 0x200   : > { %1312 = vmatpush.xpose.msk.msrb.mxu1 %vm355_vm0, %v1858_v53 }
 0x201   : > { %844 = vmatpush.msrb.mxu3 %v1873_v54 }
 0x202   : > { %1306 = vmatpush.xpose.msk.msra.mxu2 %vm355_vm0, %v1924_v62 }
 0x203   : > { %845 = vmatpush.msrb.mxu3 %v1895_v24  ;;  %1339 = vmatpush.xpose.msk.msrb.mxu0 %vm355_vm0, %v1924_v62 }
 0x204   : > { %1313 = vmatpush.xpose.msk.msrb.mxu1 %vm355_vm0, %v1873_v54 }
 0x205   : > { %846 = vmatpush.msrb.mxu3 %v1907_v47 }
 0x206   : > { %1307 = vmatpush.xpose.msk.msra.mxu2 %vm355_vm0, %v1936_v50 }
 0x207   : > { %847 = vmatpush.msrb.mxu3 %v1915_v45  ;;  %1340 = vmatpush.xpose.msk.msrb.mxu0 %vm355_vm0, %v1936_v50 }
 0x208   : > { %1314 = vmatpush.xpose.msk.msrb.mxu1 %vm355_vm0, %v1895_v24 }
 0x209   : > { %848 = vmatpush.msrb.mxu3 %v1924_v62 }
 0x20a   : > { %1322 = vmatpush.xpose.msk.msrb.mxu2 %vm355_vm0, %v1851_v16 }
 0x20b   : > { %849 = vmatpush.msrb.mxu3 %v1936_v50 }
 0x20c   : > { %1315 = vmatpush.xpose.msk.msrb.mxu1 %vm355_vm0, %v1907_v47 }
 0x20d   : > { %s1354_s24 = spop %1353 }
 0x20e   : > { %1323 = vmatpush.xpose.msk.msrb.mxu2 %vm355_vm0, %v1858_v53  ;;  %v595_v0 = vstv %s1354_s24 }
 0x20f   : > { %vm596_vm4 = vcmp.eq.s32.totalorder %v1733_v40, %v595_v0 }
 0x210   : > { %1316 = vmatpush.xpose.msk.msrb.mxu1 %vm355_vm0, %v1915_v45  ;;  %v1298_v3 = vsel %vm596_vm4, 1.0, %v1553_v2  ;;  %vm998_vm4 = vcmask 1040384  }
 0x211   : > { %1299 = vmatmul.msk.f32.vlgmr.msra.gmra.mxu1 %vm599_vm3, %v1298_v3 }
 0x212   : > { %1324 = vmatpush.xpose.msk.msrb.mxu2 %vm355_vm0, %v1873_v54 }
 0x214   : > { %1317 = vmatpush.xpose.msk.msrb.mxu1 %vm355_vm0, %v1924_v62 }
 0x216   : > { %1325 = vmatpush.xpose.msk.msrb.mxu2 %vm355_vm0, %v1895_v24 }
 0x218   : > { %1318 = vmatpush.xpose.msk.msrb.mxu1 %vm355_vm0, %v1936_v50 }
 0x21a   : > { %1326 = vmatpush.xpose.msk.msrb.mxu2 %vm355_vm0, %v1907_v47 }
 0x21c   : > { %1053 = vmatpush.msra.mxu1 %v1714_v28 }
 0x21e   : > { %1327 = vmatpush.xpose.msk.msrb.mxu2 %vm355_vm0, %v1915_v45  ;;  %1054 = vmatpush.msra.mxu1 %v1709_v15 }
 0x220   : > { %1055 = vmatpush.msra.mxu1 %v1704_v14 }
 0x222   : > { %1328 = vmatpush.xpose.msk.msrb.mxu2 %vm355_vm0, %v1924_v62  ;;  %1056 = vmatpush.msra.mxu1 %v1699_v13 }
 0x224   : > { %1057 = vmatpush.msra.mxu1 %v1694_v12 }
 0x226   : > { %1329 = vmatpush.xpose.msk.msrb.mxu2 %vm355_vm0, %v1936_v50  ;;  %1058 = vmatpush.msra.mxu1 %v1689_v11 }
 0x228   : > { %1059 = vmatpush.msra.mxu1 %v1680_v7 }
 0x22a   : > { %1060 = vmatpush.msra.mxu1 %v1675_v5 }
 0x28e   : > { %v620_v28 = vpop.f32.mrf.mxu1 }
 0x28f   : > { %1308 = vmatmul.msk.f32.vlgmr.msra.gmra.mxu2 %vm355_vm0, %v620_v28 }
 0x312   : > { %v667_v14 = vpop.f32.mrf.mxu2 }
 0x313   : > { %v670_v15 = vmul.f32 2.0, %v667_v14 }
 0x315   : > { %v671_v4 = vsub.f32 2.0, %v670_v15 }
 0x317   : > { %v672_v6 = vmax.f32 %v671_v4, 0.0 }
 0x319   : > { %v673_v8 = vsub.f32 0.0, %v672_v6 }
 0x31b   : > { %v674_v13 = vmax.f32 %v673_v8, -18.420681 }
 0x31d   : > { %v675_v18 = vmul.f32 1.442695, %v674_v13 }
 0x31f   : > { %1433 = vpow2.f32 %v675_v18 }
 0x325   : > { %v2008_v12 = vpop.eup %1433 }
 0x326   : > { %v677_v19 = vsub.f32 1.0, %v2008_v12 }
 0x328   : > { %v678_v11 = vmax.f32 %v677_v19, 1e-08 }
 0x32a   : > { %1435 = vlog2.f32 %v678_v11 }
 0x330   : > { %v1436_v7 = vpop.eup %1435 }
 0x331   : > { %v2011_v20 = vmul.f32 0.6931472, %v1436_v7 }
 0x333   : > { %v684_v5 = vadd.f32 %v2011_v20, %v1682_v9 }
 0x335   : > { %v685_v10 = vsel %vm556_vm1, %v684_v5, -inf }
 0x336   : > { %686 = vmax.xlane.f32.xlu2 %v685_v10 }
 0x3a9   : > { %v687_v21 = vpop.xlane.xlu2 %686 }
 0x3aa   : > { %v688_v22 = vrot.slane %v687_v21, 4 }
 0x3ac   : > { %v689_v23 = vmax.f32 %v687_v21, %v688_v22 }
 0x3ae   : > { %v690_v25 = vrot.slane %v689_v23, 2 }
 0x3b0   : > { %v691_v29 = vmax.f32 %v689_v23, %v690_v25 }
 0x3b2   : > { %v692_v31 = vrot.slane %v691_v29, 1 }
 0x3b4   : > { %v693_v34 = vmax.f32 %v691_v29, %v692_v31 }
 0x3b6   : > { %1355 = vpush %v693_v34 }
 0x3e7   : > { %s1356_s25 = spop %1355 }
 0x3e8   : > { %v695_v35 = vstv %s1356_s25 }
 0x3e9   : > { %vm696_vm5 = vcmp.eq.f32.partialorder %v684_v5, %v695_v35 }
 0x3ea   : > { %v697_v37 = vsel %vm696_vm5, %v1733_v40, 64  ;;  %vm1000_vm5 = vcmask 1041408  }
 0x3eb   : > { %v698_v39 = vsel %vm556_vm1, %v697_v37, 2147483647 }
 0x3ec   : > { %v700_v41 = vshra.s32 %v698_v39, 16  ;;  %v699_v43 = vand.u32 65535, %v698_v39 }
 0x3ee   : > { %v702_v42 = vcvt.s32.f32 %v700_v41  ;;  %v701_v46 = vcvt.s32.f32 %v699_v43 }
 0x3f0   : > { %703 = vmin.xlane.f32.xlu0 %v702_v42 }
 0x463   : > { %v704_v44 = vpop.xlane.xlu0 %703 }
 0x464   : > { %vm705_vm6 = vcmp.eq.f32.partialorder %v702_v42, %v704_v44  ;;  %v710_v48 = vcvt.f32.s32 %v704_v44 }
 0x465   : > { %v706_v26 = vsel %vm705_vm6, %v701_v46, inf }
 0x466   : > { %707 = vmin.xlane.f32.xlu1 %v706_v26  ;;  %v711_v52 = vshll.u32 %v710_v48, 16 }
 0x4d9   : > { %v708_v51 = vpop.xlane.xlu1 %707 }
 0x4da   : > { %v709_v58 = vcvt.f32.s32 %v708_v51 }
 0x4dc   : > { %v712_v17 = vadd.s32 %v711_v52, %v709_v58  ;;  %v682_v58 = vmul.f32 1.442695, %v2011_v20 }
 0x4de   : > { %v713_v30 = vrot.slane %v712_v17, 4 }
 0x4e0   : > { %vm714_vm7 = vcmp.lt.s32.totalorder %v712_v17, %v713_v30 }
 0x4e1   : > { %v715_v32 = vsel %vm714_vm7, %v712_v17, %v713_v30  ;;  %vm1002_vm7 = vcmask 1042432  }
 0x4e2   : > { %v716_v55 = vrot.slane %v715_v32, 2 }
 0x4e4   : > { %vm717_vm8 = vcmp.lt.s32.totalorder %v715_v32, %v716_v55 }
 0x4e5   : > { %v718_v36 = vsel %vm717_vm8, %v715_v32, %v716_v55  ;;  %vm1016_vm8 = vcmask 519168  }
 0x4e6   : > { %v719_v56 = vrot.slane %v718_v36, 1 }
 0x4e8   : > { %vm720_vm9 = vcmp.lt.s32.totalorder %v718_v36, %v719_v56 }
 0x4e9   : > { %v721_v33 = vsel %vm720_vm9, %v718_v36, %v719_v56 }
 0x4ea   : > { %1357 = vpush %v721_v33 }
 0x51b   : > { %s1358_s26 = spop %1357 }
 0x51c   : > { %v723_v57 = vstv %s1358_s26 }
 0x51d   : > { %vm724_vm10 = vcmp.eq.s32.totalorder %v1733_v40, %v723_v57 }
 0x51e   : > { %v1309_v27 = vsel %vm724_vm10, 1.0, %v1553_v2 }
 0x51f   : > { %1310 = vmatmul.msk.f32.vlgmr.msra.gmra.mxu3 %vm599_vm3, %v1309_v27 }
 0x520   : > { %946 = vmatpush.msra.mxu3 %v1851_v16 }
 0x522   : > { %947 = vmatpush.msra.mxu3 %v1858_v53 }
 0x524   : > { %948 = vmatpush.msra.mxu3 %v1873_v54 }
 0x526   : > { %949 = vmatpush.msra.mxu3 %v1895_v24 }
 0x528   : > { %950 = vmatpush.msra.mxu3 %v1907_v47 }
 0x52a   : > { %951 = vmatpush.msra.mxu3 %v1915_v45 }
 0x52c   : > { %952 = vmatpush.msra.mxu3 %v1924_v62 }
 0x52e   : > { %953 = vmatpush.msra.mxu3 %v1936_v50 }
 0x5a2   : > { %v747_v60 = vpop.f32.mrf.mxu3 }
 0x5a3   : > { %1319 = vmatmul.msk.f32.vlgmr.msrb.gmra.mxu1 %vm355_vm0, %v747_v60 }
 0x620   : > { %v770_v61 = vpop.f32.mrf.mxu1 }
 0x621   : > { %v773_v59 = vmul.f32 2.0, %v770_v61 }
 0x623   : > { %v774_v16 = vsub.f32 2.0, %v773_v59 }
 0x625   : > { %v775_v63 = vmax.f32 %v774_v16, 0.0 }
 0x627   : > { %v776_v53 = vsub.f32 0.0, %v775_v63 }
 0x629   : > { %v777_v1 = vmax.f32 %v776_v53, -18.420681 }
 0x62b   : > { %v778_v54 = vmul.f32 1.442695, %v777_v1 }
 0x62d   : > { %1437 = vpow2.f32 %v778_v54 }
 0x633   : > { %v2030_v24 = vpop.eup %1437 }
 0x634   : > { %v781_v47 = vsub.f32 1.0, %v2030_v24 }
 0x636   : > { %v782_v45 = vmax.f32 %v781_v47, 1e-08 }
 0x638   : > { %1439 = vlog2.f32 %v782_v45 }
 0x639   : > { %1441 = vpow2.f32 %v682_v58 }
 0x63e   : > { %v1440_v62 = vpop.eup %1439 }
 0x63f   : > { %v784_v49 = vmul.f32 0.6931472, %v1440_v62  ;;  %v1442_v56 = vpop.eup %1441 }
 0x640   : > { %v780_v33 = vmul.f32 %v1442_v56, %v2030_v24 }
 0x641   : > { %v2034_v38 = vadd.f32 %v784_v49, %v2011_v20 }
 0x642   : > { %v990_v60 = vrot.slane %v780_v33, 7 }
 0x643   : > { %v788_v50 = vadd.f32 %v2034_v38, %v1682_v9  ;;  %v786_v32 = vmul.f32 1.442695, %v2034_v38 }
 0x644   : > { %v999_v20 = vsel %vm998_vm4, %v2008_v12, %v990_v60  ;;  %v1554_v60 = vmov 64.0  }
 0x645   : > { %v789_v0 = vsel %vm556_vm1, %v788_v50, -inf  ;;  %1443 = vpow2.f32 %v786_v32 }
 0x646   : > { %790 = vmax.xlane.f32.xlu2 %v789_v0 }
 0x64b   : > { %v1444_v57 = vpop.eup %1443 }
 0x6b9   : > { %v791_v3 = vpop.xlane.xlu2 %790 }
 0x6ba   : > { %v792_v28 = vrot.slane %v791_v3, 4 }
 0x6bc   : > { %v793_v14 = vmax.f32 %v791_v3, %v792_v28 }
 0x6be   : > { %v794_v15 = vrot.slane %v793_v14, 2 }
 0x6c0   : > { %v795_v4 = vmax.f32 %v793_v14, %v794_v15 }
 0x6c2   : > { %v796_v6 = vrot.slane %v795_v4, 1 }
 0x6c4   : > { %v797_v8 = vmax.f32 %v795_v4, %v796_v6 }
 0x6c6   : > { %1359 = vpush %v797_v8 }
 0x6f7   : > { %s1360_s10 = spop %1359 }
 0x6f8   : > { %v799_v13 = vstv %s1360_s10 }
 0x6f9   : > { %vm800_vm11 = vcmp.eq.f32.partialorder %v788_v50, %v799_v13  ;;  %v1005_v13 = vrot.slane %v1442_v56, 7 }
 0x6fa   : > { %v801_v18 = vsel %vm800_vm11, %v1733_v40, 64 }
 0x6fb   : > { %v802_v19 = vsel %vm556_vm1, %v801_v18, 2147483647  ;;  %v1008_v18 = vrot.slane %v1444_v57, 6 }
 0x6fc   : > { %v804_v11 = vshra.s32 %v802_v19, 16  ;;  %v803_v5 = vand.u32 65535, %v802_v19 }
 0x6fe   : > { %v806_v7 = vcvt.s32.f32 %v804_v11  ;;  %v805_v21 = vcvt.s32.f32 %v803_v5  ;;  %v1013_v11 = vsel %vm998_vm4, 1.0, %v1005_v13 }
 0x700   : > { %807 = vmin.xlane.f32.xlu0 %v806_v7 }
 0x773   : > { %v808_v10 = vpop.xlane.xlu0 %807 }
 0x774   : > { %vm809_vm12 = vcmp.eq.f32.partialorder %v806_v7, %v808_v10  ;;  %v814_v23 = vcvt.f32.s32 %v808_v10  ;;  %v1014_v7 = vsel %vm1000_vm5, %v1013_v11, %v1008_v18 }
 0x775   : > { %v810_v22 = vsel %vm809_vm12, %v805_v21, inf }
 0x776   : > { %811 = vmin.xlane.f32.xlu1 %v810_v22  ;;  %v815_v29 = vshll.u32 %v814_v23, 16 }
 0x7e9   : > { %v812_v25 = vpop.xlane.xlu1 %811 }
 0x7ea   : > { %v813_v31 = vcvt.f32.s32 %v812_v25 }
 0x7ec   : > { %v816_v34 = vadd.s32 %v815_v29, %v813_v31 }
 0x7ee   : > { %v817_v35 = vrot.slane %v816_v34, 4 }
 0x7f0   : > { %vm818_vm13 = vcmp.lt.s32.totalorder %v816_v34, %v817_v35 }
 0x7f1   : > { %v819_v37 = vsel %vm818_vm13, %v816_v34, %v817_v35  ;;  %vm1036_vm13 = vcmask 7168  }
 0x7f2   : > { %v820_v39 = vrot.slane %v819_v37, 2 }
 0x7f4   : > { %vm821_vm14 = vcmp.lt.s32.totalorder %v819_v37, %v820_v39 }
 0x7f5   : > { %v822_v41 = vsel %vm821_vm14, %v819_v37, %v820_v39  ;;  %vm1038_vm14 = vcmask 15360  }
 0x7f6   : > { %v823_v42 = vrot.slane %v822_v41, 1 }
 0x7f8   : > { %vm824_vm15 = vcmp.lt.s32.totalorder %v822_v41, %v823_v42 }
 0x7f9   : > { %v825_v43 = vsel %vm824_vm15, %v822_v41, %v823_v42  ;;  %vm1040_vm15 = vcmask 19456  }
 0x7fa   : > { %1361 = vpush %v825_v43 }
 0x82b   : > { %s1362_s12 = spop %1361 }
 0x82c   : > { %v827_v44 = vstv %s1362_s12  ;;  %s1150_s12 = sshll.u32 %s2077_s20, 4  ;;  %s1151_s12 = int_to_ptr.vmem [resolvable:$true] %s1150_s12 }
 0x82d   : > { %vm828_vm2 = vcmp.eq.s32.totalorder %v1733_v40, %v827_v44 }
 0x82e   : > { %v1320_v46 = vsel %vm828_vm2, 1.0, %v1553_v2 }
 0x82f   : > { %1321 = vmatmul.msk.f32.vlgmr.msrb.gmra.mxu3 %vm599_vm3, %v1320_v46 }
 0x8b2   : > { %v851_v26 = vpop.f32.mrf.mxu3 }
 0x8b3   : > { %1330 = vmatmul.msk.f32.vlgmr.msrb.gmra.mxu2 %vm355_vm0, %v851_v26 }
 0x936   : > { %v874_v48 = vpop.f32.mrf.mxu2 }
 0x937   : > { %v877_v51 = vmul.f32 2.0, %v874_v48 }
 0x939   : > { %v878_v52 = vsub.f32 2.0, %v877_v51 }
 0x93b   : > { %v879_v17 = vmax.f32 %v878_v52, 0.0 }
 0x93d   : > { %v880_v30 = vsub.f32 0.0, %v879_v17 }
 0x93f   : > { %v881_v55 = vmax.f32 %v880_v30, -18.420681 }
 0x941   : > { %v882_v36 = vmul.f32 1.442695, %v881_v55 }
 0x943   : > { %1445 = vpow2.f32 %v882_v36 }
 0x949   : > { %v1446_v27 = vpop.eup %1445 }
 0x94a   : > { %v884_v61 = vmul.f32 %v1446_v27, %v1444_v57  ;;  %v885_v59 = vsub.f32 1.0, %v1446_v27 }
 0x94c   : > { %v993_v16 = vrot.slane %v884_v61, 6  ;;  %v886_v63 = vmax.f32 %v885_v59, 1e-08 }
 0x94e   : > { %1447 = vlog2.f32 %v886_v63  ;;  %v2051_v53 = vsel %vm1000_vm5, %v999_v20, %v993_v16  ;;  %v1084_v16 = vld [vmem:[%s2154_s4 + $0x18] sm:$0xff]  ;;  %v1083_v63 = vld [vmem:[%s2154_s4 + $0x10] sm:$0xff] }
 0x94f   : > { %1104 = vmatpush.msrb.mxu3 %v1084_v16 }
 0x951   : > { %1105 = vmatpush.msrb.mxu3 %v1083_v63 }
 0x954   : > { %v1448_v1 = vpop.eup %1447 }
 0x955   : > { %v888_v54 = vmul.f32 0.6931472, %v1448_v1  ;;  %v1081_v1 = vld [vmem:[%s2154_s4] sm:$0xff] }
 0x957   : > { %v889_v24 = vadd.f32 %v888_v54, %v2034_v38 }
 0x959   : > { %v892_v47 = vadd.f32 %v889_v24, %v1682_v9  ;;  %v890_v14 = vmul.f32 1.442695, %v889_v24 }
 0x95b   : > { %v893_v45 = vsel %vm556_vm1, %v892_v47, -inf  ;;  %1449 = vpow2.f32 %v890_v14 }
 0x95c   : > { %894 = vmax.xlane.f32.xlu2 %v893_v45 }
 0x961   : > { %v1450_v6 = vpop.eup %1449 }
 0x962   : > { %v1011_v19 = vrot.slane %v1450_v6, 5 }
 0x964   : > { %v1015_v5 = vsel %vm1002_vm7, %v1014_v7, %v1011_v19 }
 0x965   : > { %v1021_v10 = vsel %vm1016_vm8, %v1015_v5, 0.0 }
 0x9cf   : > { %v895_v62 = vpop.xlane.xlu2 %894 }
 0x9d0   : > { %v896_v49 = vrot.slane %v895_v62, 4 }
 0x9d2   : > { %v897_v50 = vmax.f32 %v895_v62, %v896_v49 }
 0x9d4   : > { %v898_v0 = vrot.slane %v897_v50, 2 }
 0x9d6   : > { %v899_v3 = vmax.f32 %v897_v50, %v898_v0 }
 0x9d8   : > { %v900_v28 = vrot.slane %v899_v3, 1 }
 0x9da   : > { %v901_v12 = vmax.f32 %v899_v3, %v900_v28 }
 0x9dc   : > { %1363 = vpush %v901_v12 }
 0xa0d   : > { %s1364_s13 = spop %1363 }
 0xa0e   : > { %v903_v15 = vstv %s1364_s13 }
 0xa0f   : > { %vm904_vm6 = vcmp.eq.f32.partialorder %v892_v47, %v903_v15 }
 0xa10   : > { %v905_v38 = vsel %vm904_vm6, %v1733_v40, 64 }
 0xa11   : > { %v906_v9 = vsel %vm556_vm1, %v905_v38, 2147483647 }
 0xa12   : > { %v908_v4 = vshra.s32 %v906_v9, 16  ;;  %v907_v21 = vand.u32 65535, %v906_v9 }
 0xa14   : > { %v910_v8 = vcvt.s32.f32 %v908_v4  ;;  %v909_v23 = vcvt.s32.f32 %v907_v21 }
 0xa16   : > { %911 = vmin.xlane.f32.xlu0 %v910_v8 }
 0xa1e   : > { %1022 = vadd.xlane.f32.xlu0 %v1021_v10 }
 0xa89   : > { %v912_v22 = vpop.xlane.xlu0 %911 }
 0xa8a   : > { %vm913_vm1 = vcmp.eq.f32.partialorder %v910_v8, %v912_v22  ;;  %v918_v29 = vcvt.f32.s32 %v912_v22 }
 0xa8b   : > { %v914_v25 = vsel %vm913_vm1, %v909_v23, inf }
 0xa8c   : > { %915 = vmin.xlane.f32.xlu1 %v914_v25  ;;  %v919_v34 = vshll.u32 %v918_v29, 16 }
 0xa91   : > { %v1023_v45 = vpop.xlane.xlu0 %1022 }
 0xaff   : > { %v916_v31 = vpop.xlane.xlu1 %915 }
 0xb00   : > { %v917_v35 = vcvt.f32.s32 %v916_v31 }
 0xb02   : > { %v920_v37 = vadd.s32 %v919_v34, %v917_v35 }
 0xb04   : > { %v921_v39 = vrot.slane %v920_v37, 4 }
 0xb06   : > { %vm922_vm9 = vcmp.lt.s32.totalorder %v920_v37, %v921_v39 }
 0xb07   : > { %v923_v41 = vsel %vm922_vm9, %v920_v37, %v921_v39 }
 0xb08   : > { %v924_v42 = vrot.slane %v923_v41, 2 }
 0xb0a   : > { %vm925_vm10 = vcmp.lt.s32.totalorder %v923_v41, %v924_v42 }
 0xb0b   : > { %v926_v43 = vsel %vm925_vm10, %v923_v41, %v924_v42 }
 0xb0c   : > { %v927_v44 = vrot.slane %v926_v43, 1 }
 0xb0e   : > { %vm928_vm11 = vcmp.lt.s32.totalorder %v926_v43, %v927_v44 }
 0xb0f   : > { %v929_v46 = vsel %vm928_vm11, %v926_v43, %v927_v44 }
 0xb10   : > { %1365 = vpush %v929_v46 }
 0xb41   : > { %s1366_s17 = spop %1365 }
 0xb42   : > { %v931_v26 = vstv %s1366_s17  ;;  %s1289_s17 = sshll.u32 %s1659_s23, 2  ;;  %s1346_s23 = sshll.u32 %s1621_s9, 2 }
 0xb43   : > { %vm932_vm12 = vcmp.eq.s32.totalorder %v1733_v40, %v931_v26  ;;  %s338_s24 = scalar_lea.vmem %s2158_s8, %s1289_s17  ;;  %s1148_s10 = scalar_lea.hbm %s2157_s7, %s1346_s23 }
 0xb44   : > { %v1331_v48 = vsel %vm932_vm12, 1.0, %v1553_v2  ;;  %s1152_s13 = sshll.u32 %s1148_s10, 4  ;;  %s1120_s17 = scalar_lea.sflag [#allocation5], %s2067_s18  ;;  %s1153_s13 = int_to_ptr.hbm [resolvable:$true] %s1152_s13 }
 0xb45   : > { %1332 = vmatmul.msk.f32.vlgmr.msra.gmra.mxu3 %vm599_vm3, %v1331_v48  ;;  %s1471_s21 = sshra.s32 %s1153_s13, 4  ;;  %s1477_s9 = scalar_lea.hbm %s2157_s7, 8  ;;  %s1472_s21 = int_to_ptr.hbm [resolvable:$true] %s1471_s21 }
 0xb46   : > { %s1473_s22 = scalar_lea.hbm %s1472_s21, 4  ;;  %p1478_p0 = scmp.lt.s32.totalorder %s1472_s21, %s2157_s7 }
 0xb47   : > { %p1474_p11 = scmp.ne.s32.totalorder %s1472_s21, %s1473_s22  ;;  %p1479_p1 = scmp.lt.s32.totalorder %s1477_s9, %s1473_s22 }
 0xb49   : > { %p1475_p12 = pnand %p1474_p11, %p1638_p5  ;;  %p1480_p2 = por %p1479_p1, %p1478_p0 }
 0xb4b   : > { %p1476_p13 = pneg %p1475_p12 }
 0xb4d   : > { %p1481_p3 = pnand %p1480_p2, %p1476_p13 }
 0xbc8   : > { %v955_v51 = vpop.f32.mrf.mxu3 }
 0xbc9   : > { %1341 = vmatmul.msk.f32.vlgmr.msrb.gmra.mxu0 %vm355_vm0, %v955_v51 }
 0xc46   : > { %v978_v52 = vpop.f32.mrf.mxu0 }
 0xc47   : > { %v981_v58 = vmul.f32 2.0, %v978_v52 }
 0xc49   : > { %v982_v17 = vsub.f32 2.0, %v981_v58 }
 0xc4b   : > { %v983_v30 = vmax.f32 %v982_v17, 0.0 }
 0xc4d   : > { %v984_v32 = vsub.f32 0.0, %v983_v30 }
 0xc4f   : > { %v985_v55 = vmax.f32 %v984_v32, -18.420681 }
 0xc51   : > { %v986_v36 = vmul.f32 1.442695, %v985_v55 }
 0xc53   : > { %1451 = vpow2.f32 %v986_v36 }
 0xc54   : > { %1453 = vrcp.f32 %v1554_v60 }
 0xc59   : > { %v1452_v40 = vpop.eup %1451 }
 0xc5a   : > { %v988_v2 = vmul.f32 %v1452_v40, %v1450_v6  ;;  %v1454_v61 = vpop.eup %1453 }
 0xc5b   : > { %v1025_v59 = vmul.f32 64.0, %v1454_v61 }
 0xc5c   : > { %v996_v56 = vrot.slane %v988_v2, 5 }
 0xc5d   : > { %v1026_v20 = vsub.f32 1.0, %v1025_v59 }
 0xc5e   : > { %v1003_v33 = vsel %vm1002_vm7, %v2051_v53, %v996_v56  ;;  %v1082_v53 = vld [vmem:[%s2154_s4 + $0x8] sm:$0xff] }
 0xc5f   : > { %1342 = vmatmul.msk.f32.vlgmr.msra.gmra.mxu1 %vm599_vm3, %v1003_v33  ;;  %v1033_v57 = vsel %vm1016_vm8, %v1003_v33, -inf  ;;  %v1018_v27 = vsel %vm1016_vm8, %v1003_v33, 0.0  ;;  %1017 = vst.msk [vmem:[%s2077_s20] sm:$0xf] %vm1016_vm8, %v1003_v33  ;;  %1106 = vmatpush.msrb.mxu3 %v1082_v53  ;;  %v1027_v54 = vmul.f32 %v1454_v61, %v1026_v20  ;;  %vm1029_vm3 = vweird.f32 %v1454_v61 }
 0xc60   : > { %1034 = vmax.xlane.f32.xlu1 %v1033_v57  ;;  %1019 = vadd.xlane.f32.xlu2 %v1018_v27 }
 0xc61   : > { %1107 = vmatpush.msrb.mxu3 %v1081_v1  ;;  %v1028_v24 = vadd.f32 %v1454_v61, %v1027_v54 }
 0xc63   : > { %v1030_v47 = vsel %vm1029_vm3, %v1454_v61, %v1028_v24 }
 0xc64   : > { %v1031_v49 = vmul.f32 %v1030_v47, %v1023_v45 }
 0xcd3   : > { %v1020_v62 = vpop.xlane.xlu2 %1019  ;;  %v1035_v3 = vpop.xlane.xlu1 %1034 }
 0xcd4   : > { %v1032_v50 = vmul.f32 0.015625, %v1020_v62  ;;  %v1065_v0 = vmax.f32 %v1020_v62, 1e-08 }
 0xcd6   : > { %v1037_v28 = vsel %vm1036_vm13, %v1031_v49, %v1032_v50  ;;  %1455 = vrcp.f32 %v1065_v0  ;;  %v1077_v9 = vand.u32 2147483648, %v1065_v0  ;;  %v1075_v6 = vand.u32 2147483647, %v1065_v0 }
 0xcd7   : > { %v1039_v12 = vsel %vm1038_vm14, %v1037_v28, %v1035_v3  ;;  %vm1071_vm4 = vweird.f32 %v1065_v0 }
 0xcd8   : > { %1041 = vst.msk [vmem:[%s338_s24] sm:$0xf] %vm1040_vm15, %v1039_v12  ;;  %v1078_v13 = vor.u32 1.1754944e-38, %v1077_v9  ;;  %vm1076_vm6 = vcmp.eq.f32.partialorder %v1075_v6, 8.507059e+37 }
 0xcdc   : > { %v1456_v14 = vpop.eup %1455  ;;  %v1062_v19 = vpop.f32.mrf.mxu1 }
 0xcdd   : > { %v1067_v15 = vmul.f32 %v1456_v14, %v1065_v0  ;;  %vm1072_vm2 = vweird.f32 %v1456_v14 }
 0xcde   : > { %vm1073_vm5 = vmor %vm1071_vm4, %vm1072_vm2 }
 0xcdf   : > { %v1068_v38 = vsub.f32 1.0, %v1067_v15 }
 0xce1   : > { %v1069_v4 = vmul.f32 %v1456_v14, %v1068_v38 }
 0xce3   : > { %v1070_v8 = vadd.f32 %v1456_v14, %v1069_v4 }
 0xce5   : > { %v1074_v18 = vsel %vm1073_vm5, %v1456_v14, %v1070_v8 }
 0xce6   : > { %v1079_v11 = vsel %vm1076_vm6, %v1078_v13, %v1074_v18 }
 0xce7   : > { %v1080_v7 = vmul.f32 %v1079_v11, %v1062_v19 }
 0xce9   : > { %1343 = vmatmul.msk.f32.vlgmr.msrb.gmra.mxu3 %vm355_vm0, %v1080_v7 }
 0xcea   : > { %1484 = shalt.err (!%p1481_p3)
}
 0xceb   : > { %1368 = dma.vmem_to_hbm [thread:$0]  (%p1638_p5), %s1151_s12, 64, %s1153_s13, %s1120_s17   ;;  %v1414_v5 = vld [vmem:[%s2155_s5] ss:$0 sm:$0xff]  ;;  %vm1112_vm0 = vcmask 125952  }
 0xcec   : > { %s1134_s26 = scalar_lea.hbm %s2156_s6, %s1346_s23  ;;  %s2178_s0 = sshll.u32 %s2067_s18, 2 }
 0xced   : > { %s313_s1 = scalar_lea.vmem [#allocation2], %s2178_s0  ;;  %s1138_s22 = sshll.u32 %s1134_s26, 4  ;;  %s1139_s22 = int_to_ptr.hbm [resolvable:$true] %s1138_s22 }
 0xcee   : > { %s1136_s21 = sshll.u32 %s313_s1, 4  ;;  %s1115_s12 = scalar_lea.sflag [#allocation3], %s2067_s18  ;;  %s1137_s21 = int_to_ptr.vmem [resolvable:$true] %s1136_s21 }
 0xcef   : > { %s1499_s13 = sshra.s32 %s1139_s22, 4  ;;  %s1505_s9 = scalar_lea.hbm %s2156_s6, 8  ;;  %s1500_s13 = int_to_ptr.hbm [resolvable:$true] %s1499_s13 }
 0xcf0   : > { %s1501_s17 = scalar_lea.hbm %s1500_s13, 4  ;;  %p1506_p9 = scmp.lt.s32.totalorder %s1500_s13, %s2156_s6 }
 0xcf1   : > { %p1502_p4 = scmp.ne.s32.totalorder %s1500_s13, %s1501_s17  ;;  %p1507_p10 = scmp.lt.s32.totalorder %s1505_s9, %s1501_s17 }
 0xcf3   : > { %p1503_p7 = pnand %p1502_p4, %p1638_p5  ;;  %p1508_p11 = por %p1507_p10, %p1506_p9 }
 0xcf5   : > { %p1504_p8 = pneg %p1503_p7 }
 0xcf7   : > { %p1509_p12 = pnand %p1508_p11, %p1504_p8 }
 0xd6c   : > { %v1109_v10 = vpop.f32.mrf.mxu3 }
 0xd6d   : > { %v1110_v21 = vadd.f32 %v1414_v5, %v1109_v10 }
 0xd6f   : > { %1113 = vst.msk [vmem:[%s313_s1] sm:$0xf] %vm1112_vm0, %v1110_v21 }
 0xd70   : > { %1512 = shalt.err (!%p1509_p12)
}
 0xd71   : > { %1367 = dma.vmem_to_hbm [thread:$0]  (%p1638_p5), %s1137_s21, 64, %s1139_s22, %s1115_s12  }
 0xd72 PF: > { %p1378_p13 = scmp.ge.s32.totalorder %s1551_s30, 2  ;;  %s1167_s18 = sand.u32 1, %s1539_s27  }
 0xd73   : > { %s1168_s26 = scalar_lea.sflag [#allocation3], %s1167_s18 }
 0xd74   : > { %p1372_p0 = pnand %p1378_p13, %p1642_p6 }
 0xd76   : > { %p1373_p1 = pneg %p1372_p0 }
 0xd78   : > { %1530 = dma.done.wait (%p1373_p1), %s1168_s26, 64  }
 0xd79   : > { %1532 = vsyncadd (%p1373_p1), %s1168_s26, 4294967232  ;;  %s1178_s10 = scalar_lea.sflag [#allocation5], %s1167_s18 }
 0xd7a   : > { %1534 = dma.done.wait (%p1373_p1), %s1178_s10, 64  }
 0xd7b   : > { %1536 = vsyncadd (%p1373_p1), %s1178_s10, 4294967232  ;;  %p22_p5 = scmp.ge.s32.totalorder %s1625_s11, 4   ;;  %s2179_s27 = smov %s1543_s28 }
 0xd7c   : > { %s2180_s28 = smov %s1547_s29  ;;  %s2181_s29 = smov %s1636_s14 }
 0xd7d   : > { %s2182_s30 = smov %s1625_s11  ;;  %24 = sbr.rel (!%p22_p5) target bundleno = 8 (0x8), region = 111 }
 0xd82   :  { %1191 = vsyncpa [#allocation3], 1 }
 0xd83   :  { %1193 = vsyncpa [#allocation3 + $0x1], 1 }
 0xd84   :  { %1194 = vsyncpa [#allocation5], 1 }
 0xd85   :  { %1196 = vsyncpa [#allocation5 + $0x1], 1 }

</bundles_post_ra>
